<compile_context>
chip_gen: v5e
topology: v5e:2x2
jax: 0.10.0
libtpu: 0.0.40
codegen_flags: <defaults>
</compile_context>

<pallas_src>
import functools

import jax
import jax.numpy as jnp
from jax.experimental import pallas as pl
from jax.experimental.pallas import tpu as pltpu


def _round_up(x, m):
    return (x + m - 1) // m * m


def cross_attention_kernel(y_ref, x_ref, wq_ref, wk_ref, wv_ref, wp_ref, bp_ref,
                           o_ref, heads_ref, *, num_heads, hd_pad):
    """One batch block (BB elements) per grid step.

    y_ref, x_ref : (BB, N, Cin_pad)  bf16 VMEM
    wq_ref       : (Cin_pad, Cp)     bf16 VMEM (transposed, scale folded, per-head padded cols)
    wk_ref       : (Cin_pad, Cp)     bf16 VMEM (transposed, per-head padded cols)
    wv_ref       : (Cin_pad, Cp)     bf16 VMEM (transposed, per-head padded cols)
    wp_ref       : (Cp, Cout_pad)    bf16 VMEM (transposed, per-head padded rows)
    bp_ref       : (1, Cout_pad)     f32  VMEM
    o_ref        : (BB, N, Cout_pad) VMEM
    heads_ref    : (BB*N, Cp)        bf16 VMEM scratch (concat of per-head outputs)
    """
    BB, N, Cin = y_ref.shape
    R = BB * N

    # Flatten the batch block so the projections run as single wide MXU matmuls.
    y2 = y_ref[...].reshape(R, Cin)
    x2 = x_ref[...].reshape(R, Cin)

    # ---- q/k/v projections: bf16 MXU inputs, f32 accumulation; scale folded into wq ----
    q = jnp.dot(y2, wq_ref[...], preferred_element_type=jnp.float32)   # (R, Cp)
    k = jnp.dot(x2, wk_ref[...], preferred_element_type=jnp.float32)   # (R, Cp)
    v = jnp.dot(x2, wv_ref[...], preferred_element_type=jnp.float32)   # (R, Cp)

    qb = q.reshape(BB, N, -1).astype(jnp.bfloat16)
    kb = k.reshape(BB, N, -1).astype(jnp.bfloat16)
    vb = v.reshape(BB, N, -1).astype(jnp.bfloat16)

    for h in range(num_heads):                  # static unroll over heads
        lo = h * hd_pad
        hi = lo + hd_pad                        # 128-aligned lane window -> unmasked slices
        qh = qb[:, :, lo:hi]                    # (BB, N, hd_pad)
        kh = kb[:, :, lo:hi]
        vh = vb[:, :, lo:hi]

        # scores: contract (zero-padded) head_dim, batched over BB -- no explicit k^T
        s = jnp.einsum("bqd,bkd->bqk", qh, kh,
                       preferred_element_type=jnp.float32)             # (BB, N, N) f32
        s = s - jnp.max(s, axis=-1, keepdims=True)
        p = jnp.exp(s)
        denom = jnp.sum(p, axis=-1, keepdims=True)                     # (BB, N, 1)
        # attn_drop is identity (p=0.0 / eval mode)

        oh = jnp.einsum("bqk,bkd->bqd", p.astype(jnp.bfloat16), vh,
                        preferred_element_type=jnp.float32)            # (BB, N, hd_pad)
        # normalize on the narrow (N, hd_pad) side; approx reciprocal -> EUP slot
        oh = oh * pl.reciprocal(denom, approx=True)

        # head-concat goes into a lane-aligned column slab of the VMEM scratch
        heads_ref[:, lo:hi] = oh.reshape(R, hd_pad).astype(jnp.bfloat16)

    # ---- single full-K output projection over all heads at once ----
    out = jnp.dot(heads_ref[...], wp_ref[...],
                  preferred_element_type=jnp.float32)                  # (R, Cout_pad)
    out = out + bp_ref[...]                                            # (1, Cout_pad) broadcast
    # proj_drop is identity (p=0.0 / eval mode)
    o_ref[...] = out.reshape(BB, N, -1).astype(o_ref.dtype)


def _pick_batch_block(B, N, target_rows=256):
    """Batch elements per grid step: amortize per-step overhead and fill the MXU
    M-dim, but keep >= 2 grid steps when possible (v7x second core + pipelining)."""
    if N % 8 != 0:
        bb = 1                                  # keep in-kernel reshapes tile-aligned
    else:
        bb = max(1, min(B, max(1, target_rows // max(N, 1))))
    if B >= 2:
        bb = min(bb, B // 2)                    # grid of at least 2 steps
    bb = max(bb, 1)
    while B % bb != 0:
        bb -= 1
    return bb


def cross_attention(x, y, wq, wkv, wproj, bproj, *, num_heads):
    """Pallas CrossAttention forward.

    x, y   : (B, N, C)
    wq     : (C, C)    PyTorch layout (out, in)
    wkv    : (2C, C)   PyTorch layout (out, in)
    wproj  : (C, C)    PyTorch layout (out, in)
    bproj  : (C,)
    """
    B, N, C = x.shape
    assert y.shape == x.shape
    assert C % num_heads == 0, "dim must be divisible by num_heads"
    head_dim = C // num_heads
    scale = head_dim ** (-0.5)

    # Padded, lane-dense layout: each head occupies a 128-aligned column block.
    hd_pad = _round_up(head_dim, 128)
    cin_pad = _round_up(C, 128)
    cout_pad = _round_up(C, 128)
    cp = num_heads * hd_pad

    # ---- host-side weight prep (one-time): transpose to (in, out), fold scale,
    #      split kv, pad per head, cast to bf16 ----
    wq_t = wq.T.astype(jnp.float32) * scale     # (C, C) -- scale folded in f32
    wk_t = wkv[:C, :].T.astype(jnp.float32)     # (C, C)
    wv_t = wkv[C:, :].T.astype(jnp.float32)     # (C, C)
    wp_t = wproj.T.astype(jnp.float32)          # (C, C)

    def pad_head_cols(w):                       # (C, C) -> (cin_pad, cp)
        w4 = w.reshape(C, num_heads, head_dim)
        w4 = jnp.pad(w4, ((0, cin_pad - C), (0, 0), (0, hd_pad - head_dim)))
        return w4.reshape(cin_pad, cp)

    def pad_head_rows(w):                       # (C, C) -> (cp, cout_pad)
        w4 = w.reshape(num_heads, head_dim, C)
        w4 = jnp.pad(w4, ((0, 0), (0, hd_pad - head_dim), (0, cout_pad - C)))
        return w4.reshape(cp, cout_pad)

    wq_p = pad_head_cols(wq_t).astype(jnp.bfloat16)
    wk_p = pad_head_cols(wk_t).astype(jnp.bfloat16)
    wv_p = pad_head_cols(wv_t).astype(jnp.bfloat16)
    wp_p = pad_head_rows(wp_t).astype(jnp.bfloat16)
    bp = jnp.pad(bproj.astype(jnp.float32), (0, cout_pad - C)).reshape(1, cout_pad)

    # Activations: pad channel dim to cin_pad (zeros), cast to bf16 for the MXU.
    y_p = jnp.pad(y, ((0, 0), (0, 0), (0, cin_pad - C))).astype(jnp.bfloat16)
    x_p = jnp.pad(x, ((0, 0), (0, 0), (0, cin_pad - C))).astype(jnp.bfloat16)

    BB = _pick_batch_block(B, N)

    kernel = functools.partial(
        cross_attention_kernel, num_heads=num_heads, hd_pad=hd_pad)

    w_in_spec = pl.BlockSpec((cin_pad, cp), lambda b: (0, 0))
    w_out_spec = pl.BlockSpec((cp, cout_pad), lambda b: (0, 0))
    act_spec = pl.BlockSpec((BB, N, cin_pad), lambda b: (b, 0, 0))

    out = pl.pallas_call(
        kernel,
        out_shape=jax.ShapeDtypeStruct((B, N, cout_pad), x.dtype),
        grid_spec=pltpu.PrefetchScalarGridSpec(
            num_scalar_prefetch=0,
            grid=(B // BB,),
            in_specs=[
                act_spec,                                      # y (padded, bf16)
                act_spec,                                      # x (padded, bf16)
                w_in_spec,                                     # wq (scaled, padded)
                w_in_spec,                                     # wk
                w_in_spec,                                     # wv
                w_out_spec,                                    # wproj
                pl.BlockSpec((1, cout_pad), lambda b: (0, 0)),  # bias (f32)
            ],
            out_specs=pl.BlockSpec((BB, N, cout_pad), lambda b: (b, 0, 0)),
            scratch_shapes=[pltpu.VMEM((BB * N, cp), jnp.bfloat16)],
        ),
        compiler_params=pltpu.CompilerParams(
            dimension_semantics=("parallel",),
            vmem_limit_bytes=48 * 1024 * 1024,
        ),
    )(y_p, x_p, wq_p, wk_p, wv_p, wp_p, bp)

    return out[:, :, :C]                        # drop channel padding


def cross_attention_ref(x, y, wq, wkv, wproj, bproj, *, num_heads):
    """Pure-JAX reference mirroring the PyTorch forward exactly (f32)."""
    B, N, C = x.shape
    hd = C // num_heads
    scale = hd ** (-0.5)

    q = y @ wq.T                                           # (B, N, C)
    kv = x @ wkv.T                                         # (B, N, 2C)
    q = q.reshape(B, N, num_heads, hd).transpose(0, 2, 1, 3)       # (B, H, N, hd)
    kv = kv.reshape(B, N, 2, num_heads, hd).transpose(2, 0, 3, 1, 4)
    k, v = kv[0], kv[1]                                    # (B, H, N, hd)

    attn = (q @ jnp.swapaxes(k, -2, -1)) * scale           # (B, H, N, N)
    attn = jax.nn.softmax(attn, axis=-1)
    out = (attn @ v).transpose(0, 2, 1, 3).reshape(B, N, C)
    return out @ wproj.T + bproj


if __name__ == "__main__":
    # Small shapes consistent with the module: dim divisible by num_heads=8.
    B, N, C = 2, 8, 32
    num_heads = 8

    key = jax.random.PRNGKey(0)
    kx, ky, kq, kkv, kp, kb = jax.random.split(key, 6)

    x = jax.random.normal(kx, (B, N, C), dtype=jnp.float32)
    y = jax.random.normal(ky, (B, N, C), dtype=jnp.float32)

    # Deterministic parameter init (PyTorch nn.Linear weight layout: (out, in)).
    wq = 0.05 * jax.random.normal(kq, (C, C), dtype=jnp.float32)
    wkv = 0.05 * jax.random.normal(kkv, (2 * C, C), dtype=jnp.float32)
    wproj = 0.05 * jax.random.normal(kp, (C, C), dtype=jnp.float32)
    bproj = 0.05 * jax.random.normal(kb, (C,), dtype=jnp.float32)

    out = cross_attention(x, y, wq, wkv, wproj, bproj, num_heads=num_heads)
    out = jax.block_until_ready(out)

    ref = cross_attention_ref(x, y, wq, wkv, wproj, bproj, num_heads=num_heads)
    assert out.shape == (B, N, C)
    # Tolerance covers bf16 MXU inputs + EUP approximate reciprocal; still far
    # tighter than any structural bug would allow.
    assert jnp.allclose(out, ref, atol=2e-2, rtol=2e-2), "mismatch vs JAX reference"

    print("KERNEL_OK")
</pallas_src>

<mosaic_0001>
module attributes {stable_mosaic.version = 11 : i64} {
  func.func @cross_attention_kernel(%arg0: i32, %arg1: memref<1x8x128xbf16, #tpu.memory_space<vmem>>, %arg2: memref<1x8x128xbf16, #tpu.memory_space<vmem>>, %arg3: memref<128x1024xbf16, #tpu.memory_space<vmem>>, %arg4: memref<128x1024xbf16, #tpu.memory_space<vmem>>, %arg5: memref<128x1024xbf16, #tpu.memory_space<vmem>>, %arg6: memref<1024x128xbf16, #tpu.memory_space<vmem>>, %arg7: memref<1x128xf32, #tpu.memory_space<vmem>>, %arg8: memref<1x8x128xf32, #tpu.memory_space<vmem>>, %arg9: memref<8x1024xbf16, #tpu.memory_space<vmem>>) attributes {dimension_semantics = [#tpu.dimension_semantics<parallel>], iteration_bounds = array<i64: 2>, scalar_prefetch = 0 : i64, scratch_operands = 1 : i64, tpu.core_type = #tpu.core_type<tc>, window_params = [{transform_indices = @transform_0, window_bounds = array<i64: 1, 8, 128>}, {transform_indices = @transform_1, window_bounds = array<i64: 1, 8, 128>}, {pipeline_mode = #tpu.pipeline_mode<synchronous>, transform_indices = @transform_2, window_bounds = array<i64: 128, 1024>}, {pipeline_mode = #tpu.pipeline_mode<synchronous>, transform_indices = @transform_3, window_bounds = array<i64: 128, 1024>}, {pipeline_mode = #tpu.pipeline_mode<synchronous>, transform_indices = @transform_4, window_bounds = array<i64: 128, 1024>}, {pipeline_mode = #tpu.pipeline_mode<synchronous>, transform_indices = @transform_5, window_bounds = array<i64: 1024, 128>}, {pipeline_mode = #tpu.pipeline_mode<synchronous>, transform_indices = @transform_6, window_bounds = array<i64: 1, 128>}, {transform_indices = @transform_7, window_bounds = array<i64: 1, 8, 128>}]} {
    %c0 = arith.constant 0 : index
    %c0_0 = arith.constant 0 : index
    %c0_1 = arith.constant 0 : index
    %0 = vector.load %arg1[%c0, %c0_0, %c0_1] : memref<1x8x128xbf16, #tpu.memory_space<vmem>>, vector<1x8x128xbf16>
    %1 = vector.shape_cast %0 : vector<1x8x128xbf16> to vector<8x128xbf16>
    %c0_2 = arith.constant 0 : index
    %c0_3 = arith.constant 0 : index
    %c0_4 = arith.constant 0 : index
    %2 = vector.load %arg2[%c0_2, %c0_3, %c0_4] : memref<1x8x128xbf16, #tpu.memory_space<vmem>>, vector<1x8x128xbf16>
    %3 = vector.shape_cast %2 : vector<1x8x128xbf16> to vector<8x128xbf16>
    %c0_5 = arith.constant 0 : index
    %c0_6 = arith.constant 0 : index
    %4 = vector.load %arg3[%c0_5, %c0_6] : memref<128x1024xbf16, #tpu.memory_space<vmem>>, vector<128x1024xbf16>
    %cst = arith.constant dense<0.000000e+00> : vector<8x1024xf32>
    %5 = tpu.matmul %1, %4, %cst {dimension_numbers = #tpu.dot_dimension_numbers<[1], [0], [0], [1], [0, 0, 1, 1], [], []>} : vector<8x128xbf16>, vector<128x1024xbf16>, vector<8x1024xf32> -> vector<8x1024xf32>
    %c0_7 = arith.constant 0 : index
    %c0_8 = arith.constant 0 : index
    %6 = vector.load %arg4[%c0_7, %c0_8] : memref<128x1024xbf16, #tpu.memory_space<vmem>>, vector<128x1024xbf16>
    %cst_9 = arith.constant dense<0.000000e+00> : vector<8x1024xf32>
    %7 = tpu.matmul %3, %6, %cst_9 {dimension_numbers = #tpu.dot_dimension_numbers<[1], [0], [0], [1], [0, 0, 1, 1], [], []>} : vector<8x128xbf16>, vector<128x1024xbf16>, vector<8x1024xf32> -> vector<8x1024xf32>
    %c0_10 = arith.constant 0 : index
    %c0_11 = arith.constant 0 : index
    %8 = vector.load %arg5[%c0_10, %c0_11] : memref<128x1024xbf16, #tpu.memory_space<vmem>>, vector<128x1024xbf16>
    %cst_12 = arith.constant dense<0.000000e+00> : vector<8x1024xf32>
    %9 = tpu.matmul %3, %8, %cst_12 {dimension_numbers = #tpu.dot_dimension_numbers<[1], [0], [0], [1], [0, 0, 1, 1], [], []>} : vector<8x128xbf16>, vector<128x1024xbf16>, vector<8x1024xf32> -> vector<8x1024xf32>
    %10 = vector.shape_cast %5 : vector<8x1024xf32> to vector<1x8x1024xf32>
    %11 = arith.truncf %10 : vector<1x8x1024xf32> to vector<1x8x1024xbf16>
    %12 = vector.shape_cast %7 : vector<8x1024xf32> to vector<1x8x1024xf32>
    %13 = arith.truncf %12 : vector<1x8x1024xf32> to vector<1x8x1024xbf16>
    %14 = vector.shape_cast %9 : vector<8x1024xf32> to vector<1x8x1024xf32>
    %15 = arith.truncf %14 : vector<1x8x1024xf32> to vector<1x8x1024xbf16>
    %16 = vector.extract_strided_slice %11 {offsets = [0, 0, 0], sizes = [1, 8, 128], strides = [1, 1, 1]} : vector<1x8x1024xbf16> to vector<1x8x128xbf16>
    %17 = vector.extract_strided_slice %13 {offsets = [0, 0, 0], sizes = [1, 8, 128], strides = [1, 1, 1]} : vector<1x8x1024xbf16> to vector<1x8x128xbf16>
    %18 = vector.extract_strided_slice %15 {offsets = [0, 0, 0], sizes = [1, 8, 128], strides = [1, 1, 1]} : vector<1x8x1024xbf16> to vector<1x8x128xbf16>
    "tpu.trace_start"() <{level = 10 : i32, message = "bqd,bkd->bqk"}> : () -> ()
    %cst_13 = arith.constant dense<0.000000e+00> : vector<1x8x8xf32>
    %19 = tpu.matmul %16, %17, %cst_13 {dimension_numbers = #tpu.dot_dimension_numbers<[2], [2], [1], [1], [0, 0, 0, 1, 1, 1], [0], [0]>} : vector<1x8x128xbf16>, vector<1x8x128xbf16>, vector<1x8x8xf32> -> vector<1x8x8xf32>
    "tpu.trace_stop"() : () -> ()
    %cst_14 = arith.constant dense<0xFF800000> : vector<1x8xf32>
    %20 = vector.multi_reduction <maximumf>, %19, %cst_14 [2] : vector<1x8x8xf32> to vector<1x8xf32>
    %21 = vector.shape_cast %20 : vector<1x8xf32> to vector<1x8x1xf32>
    %22 = vector.broadcast %21 : vector<1x8x1xf32> to vector<1x8x8xf32>
    %23 = arith.subf %19, %22 : vector<1x8x8xf32>
    %24 = math.exp %23 : vector<1x8x8xf32>
    %cst_15 = arith.constant dense<0.000000e+00> : vector<1x8xf32>
    %25 = vector.multi_reduction <add>, %24, %cst_15 [2] : vector<1x8x8xf32> to vector<1x8xf32>
    %26 = vector.shape_cast %25 : vector<1x8xf32> to vector<1x8x1xf32>
    %27 = arith.truncf %24 : vector<1x8x8xf32> to vector<1x8x8xbf16>
    "tpu.trace_start"() <{level = 10 : i32, message = "bqk,bkd->bqd"}> : () -> ()
    %cst_16 = arith.constant dense<0.000000e+00> : vector<1x8x128xf32>
    %28 = tpu.matmul %27, %18, %cst_16 {dimension_numbers = #tpu.dot_dimension_numbers<[2], [1], [1], [2], [0, 0, 0, 1, 1, 2], [0], [0]>} : vector<1x8x8xbf16>, vector<1x8x128xbf16>, vector<1x8x128xf32> -> vector<1x8x128xf32>
    "tpu.trace_stop"() : () -> ()
    %29 = tpu.reciprocal %26 {approx = true} : vector<1x8x1xf32> -> vector<1x8x1xf32>
    %30 = vector.broadcast %29 : vector<1x8x1xf32> to vector<1x8x128xf32>
    %31 = arith.mulf %28, %30 : vector<1x8x128xf32>
    %32 = vector.shape_cast %31 : vector<1x8x128xf32> to vector<8x128xf32>
    %33 = arith.truncf %32 : vector<8x128xf32> to vector<8x128xbf16>
    %c0_17 = arith.constant 0 : index
    %c0_18 = arith.constant 0 : index
    %34 = vector.load %arg9[%c0_17, %c0_18] : memref<8x1024xbf16, #tpu.memory_space<vmem>>, vector<8x128xbf16>
    tpu.vector_store %arg9[%c0_17, %c0_18], %33 {strides = array<i32>} : memref<8x1024xbf16, #tpu.memory_space<vmem>>, vector<8x128xbf16>,
    %35 = vector.extract_strided_slice %11 {offsets = [0, 0, 128], sizes = [1, 8, 128], strides = [1, 1, 1]} : vector<1x8x1024xbf16> to vector<1x8x128xbf16>
    %36 = vector.extract_strided_slice %13 {offsets = [0, 0, 128], sizes = [1, 8, 128], strides = [1, 1, 1]} : vector<1x8x1024xbf16> to vector<1x8x128xbf16>
    %37 = vector.extract_strided_slice %15 {offsets = [0, 0, 128], sizes = [1, 8, 128], strides = [1, 1, 1]} : vector<1x8x1024xbf16> to vector<1x8x128xbf16>
    "tpu.trace_start"() <{level = 10 : i32, message = "bqd,bkd->bqk"}> : () -> ()
    %cst_19 = arith.constant dense<0.000000e+00> : vector<1x8x8xf32>
    %38 = tpu.matmul %35, %36, %cst_19 {dimension_numbers = #tpu.dot_dimension_numbers<[2], [2], [1], [1], [0, 0, 0, 1, 1, 1], [0], [0]>} : vector<1x8x128xbf16>, vector<1x8x128xbf16>, vector<1x8x8xf32> -> vector<1x8x8xf32>
    "tpu.trace_stop"() : () -> ()
    %cst_20 = arith.constant dense<0xFF800000> : vector<1x8xf32>
    %39 = vector.multi_reduction <maximumf>, %38, %cst_20 [2] : vector<1x8x8xf32> to vector<1x8xf32>
    %40 = vector.shape_cast %39 : vector<1x8xf32> to vector<1x8x1xf32>
    %41 = vector.broadcast %40 : vector<1x8x1xf32> to vector<1x8x8xf32>
    %42 = arith.subf %38, %41 : vector<1x8x8xf32>
    %43 = math.exp %42 : vector<1x8x8xf32>
    %cst_21 = arith.constant dense<0.000000e+00> : vector<1x8xf32>
    %44 = vector.multi_reduction <add>, %43, %cst_21 [2] : vector<1x8x8xf32> to vector<1x8xf32>
    %45 = vector.shape_cast %44 : vector<1x8xf32> to vector<1x8x1xf32>
    %46 = arith.truncf %43 : vector<1x8x8xf32> to vector<1x8x8xbf16>
    "tpu.trace_start"() <{level = 10 : i32, message = "bqk,bkd->bqd"}> : () -> ()
    %cst_22 = arith.constant dense<0.000000e+00> : vector<1x8x128xf32>
    %47 = tpu.matmul %46, %37, %cst_22 {dimension_numbers = #tpu.dot_dimension_numbers<[2], [1], [1], [2], [0, 0, 0, 1, 1, 2], [0], [0]>} : vector<1x8x8xbf16>, vector<1x8x128xbf16>, vector<1x8x128xf32> -> vector<1x8x128xf32>
    "tpu.trace_stop"() : () -> ()
    %48 = tpu.reciprocal %45 {approx = true} : vector<1x8x1xf32> -> vector<1x8x1xf32>
    %49 = vector.broadcast %48 : vector<1x8x1xf32> to vector<1x8x128xf32>
    %50 = arith.mulf %47, %49 : vector<1x8x128xf32>
    %51 = vector.shape_cast %50 : vector<1x8x128xf32> to vector<8x128xf32>
    %52 = arith.truncf %51 : vector<8x128xf32> to vector<8x128xbf16>
    %c0_23 = arith.constant 0 : index
    %c128 = arith.constant 128 : index
    %53 = vector.load %arg9[%c0_23, %c128] : memref<8x1024xbf16, #tpu.memory_space<vmem>>, vector<8x128xbf16>
    tpu.vector_store %arg9[%c0_23, %c128], %52 {strides = array<i32>} : memref<8x1024xbf16, #tpu.memory_space<vmem>>, vector<8x128xbf16>,
    %54 = vector.extract_strided_slice %11 {offsets = [0, 0, 256], sizes = [1, 8, 128], strides = [1, 1, 1]} : vector<1x8x1024xbf16> to vector<1x8x128xbf16>
    %55 = vector.extract_strided_slice %13 {offsets = [0, 0, 256], sizes = [1, 8, 128], strides = [1, 1, 1]} : vector<1x8x1024xbf16> to vector<1x8x128xbf16>
    %56 = vector.extract_strided_slice %15 {offsets = [0, 0, 256], sizes = [1, 8, 128], strides = [1, 1, 1]} : vector<1x8x1024xbf16> to vector<1x8x128xbf16>
    "tpu.trace_start"() <{level = 10 : i32, message = "bqd,bkd->bqk"}> : () -> ()
    %cst_24 = arith.constant dense<0.000000e+00> : vector<1x8x8xf32>
    %57 = tpu.matmul %54, %55, %cst_24 {dimension_numbers = #tpu.dot_dimension_numbers<[2], [2], [1], [1], [0, 0, 0, 1, 1, 1], [0], [0]>} : vector<1x8x128xbf16>, vector<1x8x128xbf16>, vector<1x8x8xf32> -> vector<1x8x8xf32>
    "tpu.trace_stop"() : () -> ()
    %cst_25 = arith.constant dense<0xFF800000> : vector<1x8xf32>
    %58 = vector.multi_reduction <maximumf>, %57, %cst_25 [2] : vector<1x8x8xf32> to vector<1x8xf32>
    %59 = vector.shape_cast %58 : vector<1x8xf32> to vector<1x8x1xf32>
    %60 = vector.broadcast %59 : vector<1x8x1xf32> to vector<1x8x8xf32>
    %61 = arith.subf %57, %60 : vector<1x8x8xf32>
    %62 = math.exp %61 : vector<1x8x8xf32>
    %cst_26 = arith.constant dense<0.000000e+00> : vector<1x8xf32>
    %63 = vector.multi_reduction <add>, %62, %cst_26 [2] : vector<1x8x8xf32> to vector<1x8xf32>
    %64 = vector.shape_cast %63 : vector<1x8xf32> to vector<1x8x1xf32>
    %65 = arith.truncf %62 : vector<1x8x8xf32> to vector<1x8x8xbf16>
    "tpu.trace_start"() <{level = 10 : i32, message = "bqk,bkd->bqd"}> : () -> ()
    %cst_27 = arith.constant dense<0.000000e+00> : vector<1x8x128xf32>
    %66 = tpu.matmul %65, %56, %cst_27 {dimension_numbers = #tpu.dot_dimension_numbers<[2], [1], [1], [2], [0, 0, 0, 1, 1, 2], [0], [0]>} : vector<1x8x8xbf16>, vector<1x8x128xbf16>, vector<1x8x128xf32> -> vector<1x8x128xf32>
    "tpu.trace_stop"() : () -> ()
    %67 = tpu.reciprocal %64 {approx = true} : vector<1x8x1xf32> -> vector<1x8x1xf32>
    %68 = vector.broadcast %67 : vector<1x8x1xf32> to vector<1x8x128xf32>
    %69 = arith.mulf %66, %68 : vector<1x8x128xf32>
    %70 = vector.shape_cast %69 : vector<1x8x128xf32> to vector<8x128xf32>
    %71 = arith.truncf %70 : vector<8x128xf32> to vector<8x128xbf16>
    %c0_28 = arith.constant 0 : index
    %c256 = arith.constant 256 : index
    %72 = vector.load %arg9[%c0_28, %c256] : memref<8x1024xbf16, #tpu.memory_space<vmem>>, vector<8x128xbf16>
    tpu.vector_store %arg9[%c0_28, %c256], %71 {strides = array<i32>} : memref<8x1024xbf16, #tpu.memory_space<vmem>>, vector<8x128xbf16>,
    %73 = vector.extract_strided_slice %11 {offsets = [0, 0, 384], sizes = [1, 8, 128], strides = [1, 1, 1]} : vector<1x8x1024xbf16> to vector<1x8x128xbf16>
    %74 = vector.extract_strided_slice %13 {offsets = [0, 0, 384], sizes = [1, 8, 128], strides = [1, 1, 1]} : vector<1x8x1024xbf16> to vector<1x8x128xbf16>
    %75 = vector.extract_strided_slice %15 {offsets = [0, 0, 384], sizes = [1, 8, 128], strides = [1, 1, 1]} : vector<1x8x1024xbf16> to vector<1x8x128xbf16>
    "tpu.trace_start"() <{level = 10 : i32, message = "bqd,bkd->bqk"}> : () -> ()
    %cst_29 = arith.constant dense<0.000000e+00> : vector<1x8x8xf32>
    %76 = tpu.matmul %73, %74, %cst_29 {dimension_numbers = #tpu.dot_dimension_numbers<[2], [2], [1], [1], [0, 0, 0, 1, 1, 1], [0], [0]>} : vector<1x8x128xbf16>, vector<1x8x128xbf16>, vector<1x8x8xf32> -> vector<1x8x8xf32>
    "tpu.trace_stop"() : () -> ()
    %cst_30 = arith.constant dense<0xFF800000> : vector<1x8xf32>
    %77 = vector.multi_reduction <maximumf>, %76, %cst_30 [2] : vector<1x8x8xf32> to vector<1x8xf32>
    %78 = vector.shape_cast %77 : vector<1x8xf32> to vector<1x8x1xf32>
    %79 = vector.broadcast %78 : vector<1x8x1xf32> to vector<1x8x8xf32>
    %80 = arith.subf %76, %79 : vector<1x8x8xf32>
    %81 = math.exp %80 : vector<1x8x8xf32>
    %cst_31 = arith.constant dense<0.000000e+00> : vector<1x8xf32>
    %82 = vector.multi_reduction <add>, %81, %cst_31 [2] : vector<1x8x8xf32> to vector<1x8xf32>
    %83 = vector.shape_cast %82 : vector<1x8xf32> to vector<1x8x1xf32>
    %84 = arith.truncf %81 : vector<1x8x8xf32> to vector<1x8x8xbf16>
    "tpu.trace_start"() <{level = 10 : i32, message = "bqk,bkd->bqd"}> : () -> ()
    %cst_32 = arith.constant dense<0.000000e+00> : vector<1x8x128xf32>
    %85 = tpu.matmul %84, %75, %cst_32 {dimension_numbers = #tpu.dot_dimension_numbers<[2], [1], [1], [2], [0, 0, 0, 1, 1, 2], [0], [0]>} : vector<1x8x8xbf16>, vector<1x8x128xbf16>, vector<1x8x128xf32> -> vector<1x8x128xf32>
    "tpu.trace_stop"() : () -> ()
    %86 = tpu.reciprocal %83 {approx = true} : vector<1x8x1xf32> -> vector<1x8x1xf32>
    %87 = vector.broadcast %86 : vector<1x8x1xf32> to vector<1x8x128xf32>
    %88 = arith.mulf %85, %87 : vector<1x8x128xf32>
    %89 = vector.shape_cast %88 : vector<1x8x128xf32> to vector<8x128xf32>
    %90 = arith.truncf %89 : vector<8x128xf32> to vector<8x128xbf16>
    %c0_33 = arith.constant 0 : index
    %c384 = arith.constant 384 : index
    %91 = vector.load %arg9[%c0_33, %c384] : memref<8x1024xbf16, #tpu.memory_space<vmem>>, vector<8x128xbf16>
    tpu.vector_store %arg9[%c0_33, %c384], %90 {strides = array<i32>} : memref<8x1024xbf16, #tpu.memory_space<vmem>>, vector<8x128xbf16>,
    %92 = vector.extract_strided_slice %11 {offsets = [0, 0, 512], sizes = [1, 8, 128], strides = [1, 1, 1]} : vector<1x8x1024xbf16> to vector<1x8x128xbf16>
    %93 = vector.extract_strided_slice %13 {offsets = [0, 0, 512], sizes = [1, 8, 128], strides = [1, 1, 1]} : vector<1x8x1024xbf16> to vector<1x8x128xbf16>
    %94 = vector.extract_strided_slice %15 {offsets = [0, 0, 512], sizes = [1, 8, 128], strides = [1, 1, 1]} : vector<1x8x1024xbf16> to vector<1x8x128xbf16>
    "tpu.trace_start"() <{level = 10 : i32, message = "bqd,bkd->bqk"}> : () -> ()
    %cst_34 = arith.constant dense<0.000000e+00> : vector<1x8x8xf32>
    %95 = tpu.matmul %92, %93, %cst_34 {dimension_numbers = #tpu.dot_dimension_numbers<[2], [2], [1], [1], [0, 0, 0, 1, 1, 1], [0], [0]>} : vector<1x8x128xbf16>, vector<1x8x128xbf16>, vector<1x8x8xf32> -> vector<1x8x8xf32>
    "tpu.trace_stop"() : () -> ()
    %cst_35 = arith.constant dense<0xFF800000> : vector<1x8xf32>
    %96 = vector.multi_reduction <maximumf>, %95, %cst_35 [2] : vector<1x8x8xf32> to vector<1x8xf32>
    %97 = vector.shape_cast %96 : vector<1x8xf32> to vector<1x8x1xf32>
    %98 = vector.broadcast %97 : vector<1x8x1xf32> to vector<1x8x8xf32>
    %99 = arith.subf %95, %98 : vector<1x8x8xf32>
    %100 = math.exp %99 : vector<1x8x8xf32>
    %cst_36 = arith.constant dense<0.000000e+00> : vector<1x8xf32>
    %101 = vector.multi_reduction <add>, %100, %cst_36 [2] : vector<1x8x8xf32> to vector<1x8xf32>
    %102 = vector.shape_cast %101 : vector<1x8xf32> to vector<1x8x1xf32>
    %103 = arith.truncf %100 : vector<1x8x8xf32> to vector<1x8x8xbf16>
    "tpu.trace_start"() <{level = 10 : i32, message = "bqk,bkd->bqd"}> : () -> ()
    %cst_37 = arith.constant dense<0.000000e+00> : vector<1x8x128xf32>
    %104 = tpu.matmul %103, %94, %cst_37 {dimension_numbers = #tpu.dot_dimension_numbers<[2], [1], [1], [2], [0, 0, 0, 1, 1, 2], [0], [0]>} : vector<1x8x8xbf16>, vector<1x8x128xbf16>, vector<1x8x128xf32> -> vector<1x8x128xf32>
    "tpu.trace_stop"() : () -> ()
    %105 = tpu.reciprocal %102 {approx = true} : vector<1x8x1xf32> -> vector<1x8x1xf32>
    %106 = vector.broadcast %105 : vector<1x8x1xf32> to vector<1x8x128xf32>
    %107 = arith.mulf %104, %106 : vector<1x8x128xf32>
    %108 = vector.shape_cast %107 : vector<1x8x128xf32> to vector<8x128xf32>
    %109 = arith.truncf %108 : vector<8x128xf32> to vector<8x128xbf16>
    %c0_38 = arith.constant 0 : index
    %c512 = arith.constant 512 : index
    %110 = vector.load %arg9[%c0_38, %c512] : memref<8x1024xbf16, #tpu.memory_space<vmem>>, vector<8x128xbf16>
    tpu.vector_store %arg9[%c0_38, %c512], %109 {strides = array<i32>} : memref<8x1024xbf16, #tpu.memory_space<vmem>>, vector<8x128xbf16>,
    %111 = vector.extract_strided_slice %11 {offsets = [0, 0, 640], sizes = [1, 8, 128], strides = [1, 1, 1]} : vector<1x8x1024xbf16> to vector<1x8x128xbf16>
    %112 = vector.extract_strided_slice %13 {offsets = [0, 0, 640], sizes = [1, 8, 128], strides = [1, 1, 1]} : vector<1x8x1024xbf16> to vector<1x8x128xbf16>
    %113 = vector.extract_strided_slice %15 {offsets = [0, 0, 640], sizes = [1, 8, 128], strides = [1, 1, 1]} : vector<1x8x1024xbf16> to vector<1x8x128xbf16>
    "tpu.trace_start"() <{level = 10 : i32, message = "bqd,bkd->bqk"}> : () -> ()
    %cst_39 = arith.constant dense<0.000000e+00> : vector<1x8x8xf32>
    %114 = tpu.matmul %111, %112, %cst_39 {dimension_numbers = #tpu.dot_dimension_numbers<[2], [2], [1], [1], [0, 0, 0, 1, 1, 1], [0], [0]>} : vector<1x8x128xbf16>, vector<1x8x128xbf16>, vector<1x8x8xf32> -> vector<1x8x8xf32>
    "tpu.trace_stop"() : () -> ()
    %cst_40 = arith.constant dense<0xFF800000> : vector<1x8xf32>
    %115 = vector.multi_reduction <maximumf>, %114, %cst_40 [2] : vector<1x8x8xf32> to vector<1x8xf32>
    %116 = vector.shape_cast %115 : vector<1x8xf32> to vector<1x8x1xf32>
    %117 = vector.broadcast %116 : vector<1x8x1xf32> to vector<1x8x8xf32>
    %118 = arith.subf %114, %117 : vector<1x8x8xf32>
    %119 = math.exp %118 : vector<1x8x8xf32>
    %cst_41 = arith.constant dense<0.000000e+00> : vector<1x8xf32>
    %120 = vector.multi_reduction <add>, %119, %cst_41 [2] : vector<1x8x8xf32> to vector<1x8xf32>
    %121 = vector.shape_cast %120 : vector<1x8xf32> to vector<1x8x1xf32>
    %122 = arith.truncf %119 : vector<1x8x8xf32> to vector<1x8x8xbf16>
    "tpu.trace_start"() <{level = 10 : i32, message = "bqk,bkd->bqd"}> : () -> ()
    %cst_42 = arith.constant dense<0.000000e+00> : vector<1x8x128xf32>
    %123 = tpu.matmul %122, %113, %cst_42 {dimension_numbers = #tpu.dot_dimension_numbers<[2], [1], [1], [2], [0, 0, 0, 1, 1, 2], [0], [0]>} : vector<1x8x8xbf16>, vector<1x8x128xbf16>, vector<1x8x128xf32> -> vector<1x8x128xf32>
    "tpu.trace_stop"() : () -> ()
    %124 = tpu.reciprocal %121 {approx = true} : vector<1x8x1xf32> -> vector<1x8x1xf32>
    %125 = vector.broadcast %124 : vector<1x8x1xf32> to vector<1x8x128xf32>
    %126 = arith.mulf %123, %125 : vector<1x8x128xf32>
    %127 = vector.shape_cast %126 : vector<1x8x128xf32> to vector<8x128xf32>
    %128 = arith.truncf %127 : vector<8x128xf32> to vector<8x128xbf16>
    %c0_43 = arith.constant 0 : index
    %c640 = arith.constant 640 : index
    %129 = vector.load %arg9[%c0_43, %c640] : memref<8x1024xbf16, #tpu.memory_space<vmem>>, vector<8x128xbf16>
    tpu.vector_store %arg9[%c0_43, %c640], %128 {strides = array<i32>} : memref<8x1024xbf16, #tpu.memory_space<vmem>>, vector<8x128xbf16>,
    %130 = vector.extract_strided_slice %11 {offsets = [0, 0, 768], sizes = [1, 8, 128], strides = [1, 1, 1]} : vector<1x8x1024xbf16> to vector<1x8x128xbf16>
    %131 = vector.extract_strided_slice %13 {offsets = [0, 0, 768], sizes = [1, 8, 128], strides = [1, 1, 1]} : vector<1x8x1024xbf16> to vector<1x8x128xbf16>
    %132 = vector.extract_strided_slice %15 {offsets = [0, 0, 768], sizes = [1, 8, 128], strides = [1, 1, 1]} : vector<1x8x1024xbf16> to vector<1x8x128xbf16>
    "tpu.trace_start"() <{level = 10 : i32, message = "bqd,bkd->bqk"}> : () -> ()
    %cst_44 = arith.constant dense<0.000000e+00> : vector<1x8x8xf32>
    %133 = tpu.matmul %130, %131, %cst_44 {dimension_numbers = #tpu.dot_dimension_numbers<[2], [2], [1], [1], [0, 0, 0, 1, 1, 1], [0], [0]>} : vector<1x8x128xbf16>, vector<1x8x128xbf16>, vector<1x8x8xf32> -> vector<1x8x8xf32>
    "tpu.trace_stop"() : () -> ()
    %cst_45 = arith.constant dense<0xFF800000> : vector<1x8xf32>
    %134 = vector.multi_reduction <maximumf>, %133, %cst_45 [2] : vector<1x8x8xf32> to vector<1x8xf32>
    %135 = vector.shape_cast %134 : vector<1x8xf32> to vector<1x8x1xf32>
    %136 = vector.broadcast %135 : vector<1x8x1xf32> to vector<1x8x8xf32>
    %137 = arith.subf %133, %136 : vector<1x8x8xf32>
    %138 = math.exp %137 : vector<1x8x8xf32>
    %cst_46 = arith.constant dense<0.000000e+00> : vector<1x8xf32>
    %139 = vector.multi_reduction <add>, %138, %cst_46 [2] : vector<1x8x8xf32> to vector<1x8xf32>
    %140 = vector.shape_cast %139 : vector<1x8xf32> to vector<1x8x1xf32>
    %141 = arith.truncf %138 : vector<1x8x8xf32> to vector<1x8x8xbf16>
    "tpu.trace_start"() <{level = 10 : i32, message = "bqk,bkd->bqd"}> : () -> ()
    %cst_47 = arith.constant dense<0.000000e+00> : vector<1x8x128xf32>
    %142 = tpu.matmul %141, %132, %cst_47 {dimension_numbers = #tpu.dot_dimension_numbers<[2], [1], [1], [2], [0, 0, 0, 1, 1, 2], [0], [0]>} : vector<1x8x8xbf16>, vector<1x8x128xbf16>, vector<1x8x128xf32> -> vector<1x8x128xf32>
    "tpu.trace_stop"() : () -> ()
    %143 = tpu.reciprocal %140 {approx = true} : vector<1x8x1xf32> -> vector<1x8x1xf32>
    %144 = vector.broadcast %143 : vector<1x8x1xf32> to vector<1x8x128xf32>
    %145 = arith.mulf %142, %144 : vector<1x8x128xf32>
    %146 = vector.shape_cast %145 : vector<1x8x128xf32> to vector<8x128xf32>
    %147 = arith.truncf %146 : vector<8x128xf32> to vector<8x128xbf16>
    %c0_48 = arith.constant 0 : index
    %c768 = arith.constant 768 : index
    %148 = vector.load %arg9[%c0_48, %c768] : memref<8x1024xbf16, #tpu.memory_space<vmem>>, vector<8x128xbf16>
    tpu.vector_store %arg9[%c0_48, %c768], %147 {strides = array<i32>} : memref<8x1024xbf16, #tpu.memory_space<vmem>>, vector<8x128xbf16>,
    %149 = vector.extract_strided_slice %11 {offsets = [0, 0, 896], sizes = [1, 8, 128], strides = [1, 1, 1]} : vector<1x8x1024xbf16> to vector<1x8x128xbf16>
    %150 = vector.extract_strided_slice %13 {offsets = [0, 0, 896], sizes = [1, 8, 128], strides = [1, 1, 1]} : vector<1x8x1024xbf16> to vector<1x8x128xbf16>
    %151 = vector.extract_strided_slice %15 {offsets = [0, 0, 896], sizes = [1, 8, 128], strides = [1, 1, 1]} : vector<1x8x1024xbf16> to vector<1x8x128xbf16>
    "tpu.trace_start"() <{level = 10 : i32, message = "bqd,bkd->bqk"}> : () -> ()
    %cst_49 = arith.constant dense<0.000000e+00> : vector<1x8x8xf32>
    %152 = tpu.matmul %149, %150, %cst_49 {dimension_numbers = #tpu.dot_dimension_numbers<[2], [2], [1], [1], [0, 0, 0, 1, 1, 1], [0], [0]>} : vector<1x8x128xbf16>, vector<1x8x128xbf16>, vector<1x8x8xf32> -> vector<1x8x8xf32>
    "tpu.trace_stop"() : () -> ()
    %cst_50 = arith.constant dense<0xFF800000> : vector<1x8xf32>
    %153 = vector.multi_reduction <maximumf>, %152, %cst_50 [2] : vector<1x8x8xf32> to vector<1x8xf32>
    %154 = vector.shape_cast %153 : vector<1x8xf32> to vector<1x8x1xf32>
    %155 = vector.broadcast %154 : vector<1x8x1xf32> to vector<1x8x8xf32>
    %156 = arith.subf %152, %155 : vector<1x8x8xf32>
    %157 = math.exp %156 : vector<1x8x8xf32>
    %cst_51 = arith.constant dense<0.000000e+00> : vector<1x8xf32>
    %158 = vector.multi_reduction <add>, %157, %cst_51 [2] : vector<1x8x8xf32> to vector<1x8xf32>
    %159 = vector.shape_cast %158 : vector<1x8xf32> to vector<1x8x1xf32>
    %160 = arith.truncf %157 : vector<1x8x8xf32> to vector<1x8x8xbf16>
    "tpu.trace_start"() <{level = 10 : i32, message = "bqk,bkd->bqd"}> : () -> ()
    %cst_52 = arith.constant dense<0.000000e+00> : vector<1x8x128xf32>
    %161 = tpu.matmul %160, %151, %cst_52 {dimension_numbers = #tpu.dot_dimension_numbers<[2], [1], [1], [2], [0, 0, 0, 1, 1, 2], [0], [0]>} : vector<1x8x8xbf16>, vector<1x8x128xbf16>, vector<1x8x128xf32> -> vector<1x8x128xf32>
    "tpu.trace_stop"() : () -> ()
    %162 = tpu.reciprocal %159 {approx = true} : vector<1x8x1xf32> -> vector<1x8x1xf32>
    %163 = vector.broadcast %162 : vector<1x8x1xf32> to vector<1x8x128xf32>
    %164 = arith.mulf %161, %163 : vector<1x8x128xf32>
    %165 = vector.shape_cast %164 : vector<1x8x128xf32> to vector<8x128xf32>
    %166 = arith.truncf %165 : vector<8x128xf32> to vector<8x128xbf16>
    %c0_53 = arith.constant 0 : index
    %c896 = arith.constant 896 : index
    %167 = vector.load %arg9[%c0_53, %c896] : memref<8x1024xbf16, #tpu.memory_space<vmem>>, vector<8x128xbf16>
    tpu.vector_store %arg9[%c0_53, %c896], %166 {strides = array<i32>} : memref<8x1024xbf16, #tpu.memory_space<vmem>>, vector<8x128xbf16>,
    %c0_54 = arith.constant 0 : index
    %c0_55 = arith.constant 0 : index
    %168 = vector.load %arg9[%c0_54, %c0_55] : memref<8x1024xbf16, #tpu.memory_space<vmem>>, vector<8x1024xbf16>
    %c0_56 = arith.constant 0 : index
    %c0_57 = arith.constant 0 : index
    %169 = vector.load %arg6[%c0_56, %c0_57] : memref<1024x128xbf16, #tpu.memory_space<vmem>>, vector<1024x128xbf16>
    %cst_58 = arith.constant dense<0.000000e+00> : vector<8x128xf32>
    %170 = tpu.matmul %168, %169, %cst_58 {dimension_numbers = #tpu.dot_dimension_numbers<[1], [0], [0], [1], [0, 0, 1, 1], [], []>} : vector<8x1024xbf16>, vector<1024x128xbf16>, vector<8x128xf32> -> vector<8x128xf32>
    %c0_59 = arith.constant 0 : index
    %c0_60 = arith.constant 0 : index
    %171 = vector.load %arg7[%c0_59, %c0_60] : memref<1x128xf32, #tpu.memory_space<vmem>>, vector<1x128xf32>
    %172 = vector.broadcast %171 : vector<1x128xf32> to vector<8x128xf32>
    %173 = arith.addf %170, %172 : vector<8x128xf32>
    %174 = vector.shape_cast %173 : vector<8x128xf32> to vector<1x8x128xf32>
    %c0_61 = arith.constant 0 : index
    %c0_62 = arith.constant 0 : index
    %c0_63 = arith.constant 0 : index
    %175 = vector.load %arg8[%c0_61, %c0_62, %c0_63] : memref<1x8x128xf32, #tpu.memory_space<vmem>>, vector<1x8x128xf32>
    tpu.vector_store %arg8[%c0_61, %c0_62, %c0_63], %174 {strides = array<i32>} : memref<1x8x128xf32, #tpu.memory_space<vmem>>, vector<1x8x128xf32>,
    return
  }
  func.func @transform_0(%arg0: i32) -> (i32, i32, i32) {
    %c0_i32 = arith.constant 0 : i32
    %c0_i32_0 = arith.constant 0 : i32
    %c0_i32_1 = arith.constant 0 : i32
    return %arg0, %c0_i32, %c0_i32_0 : i32, i32, i32
  }
  func.func @transform_1(%arg0: i32) -> (i32, i32, i32) {
    %c0_i32 = arith.constant 0 : i32
    %c0_i32_0 = arith.constant 0 : i32
    %c0_i32_1 = arith.constant 0 : i32
    return %arg0, %c0_i32, %c0_i32_0 : i32, i32, i32
  }
  func.func @transform_2(%arg0: i32) -> (i32, i32) {
    %c0_i32 = arith.constant 0 : i32
    %c0_i32_0 = arith.constant 0 : i32
    %c0_i32_1 = arith.constant 0 : i32
    return %c0_i32, %c0_i32_0 : i32, i32
  }
  func.func @transform_3(%arg0: i32) -> (i32, i32) {
    %c0_i32 = arith.constant 0 : i32
    %c0_i32_0 = arith.constant 0 : i32
    %c0_i32_1 = arith.constant 0 : i32
    return %c0_i32, %c0_i32_0 : i32, i32
  }
  func.func @transform_4(%arg0: i32) -> (i32, i32) {
    %c0_i32 = arith.constant 0 : i32
    %c0_i32_0 = arith.constant 0 : i32
    %c0_i32_1 = arith.constant 0 : i32
    return %c0_i32, %c0_i32_0 : i32, i32
  }
  func.func @transform_5(%arg0: i32) -> (i32, i32) {
    %c0_i32 = arith.constant 0 : i32
    %c0_i32_0 = arith.constant 0 : i32
    %c0_i32_1 = arith.constant 0 : i32
    return %c0_i32, %c0_i32_0 : i32, i32
  }
  func.func @transform_6(%arg0: i32) -> (i32, i32) {
    %c0_i32 = arith.constant 0 : i32
    %c0_i32_0 = arith.constant 0 : i32
    %c0_i32_1 = arith.constant 0 : i32
    return %c0_i32, %c0_i32_0 : i32, i32
  }
  func.func @transform_7(%arg0: i32) -> (i32, i32, i32) {
    %c0_i32 = arith.constant 0 : i32
    %c0_i32_0 = arith.constant 0 : i32
    %c0_i32_1 = arith.constant 0 : i32
    return %arg0, %c0_i32, %c0_i32_0 : i32, i32, i32
  }
}

</mosaic_0001>

<bundles_post_ra>
// kernel: tpu_custom_call.1
= control target key start
LH: loop header
LB: loop body
LE: loop exit
PB: predicated region body
PF: predicated region fallthrough
CT: control target
= control target key end

     0   :  { %s5123_s0 = inlined_call_operand.hbm [shape: bf16[2,8,128], index: 0, kind: input, shape index: {}]   ;;  %s5124_s1 = inlined_call_operand.hbm [shape: bf16[2,8,128], index: 1, kind: input, shape index: {}]   ;;  %s5125_s2 = inlined_call_operand.hbm [shape: bf16[128,1024], index: 2, kind: input, shape index: {}]   ;;  %s5126_s3 = inlined_call_operand.hbm [shape: bf16[128,1024], index: 3, kind: input, shape index: {}]   ;;  %s5127_s4 = inlined_call_operand.hbm [shape: bf16[128,1024], index: 4, kind: input, shape index: {}]   ;;  %s5128_s5 = inlined_call_operand.hbm [shape: bf16[1024,128], index: 5, kind: input, shape index: {}]   ;;  %s5129_s6 = inlined_call_operand.vmem [shape: f32[1,128], index: 6, kind: input, shape index: {}]   ;;  %s5130_s7 = inlined_call_operand.hbm [shape: f32[2,8,128], index: 7, kind: output, shape index: {}]  }
   0x1   :  { %5132 = sst [smem:[#allocation23_spill]] %s5125_s2 }
   0x2   :  { %5133 = sst [smem:[#allocation24_spill]] %s5126_s3 }
   0x3   :  { %5134 = sst [smem:[#allocation25_spill]] %s5127_s4 }
   0x4   :  { %5135 = sst [smem:[#allocation26_spill]] %s5128_s5 }
   0x5   :  { %12 = vsyncpa [#allocation4], 0 }
   0x6   :  { %14 = vsyncpa [#allocation4 + $0x1], 0 }
   0x7   :  { %15 = vsyncpa [#allocation7], 0 }
   0x8   :  { %17 = vsyncpa [#allocation7 + $0x1], 0 }
   0x9   :  { %18 = vsyncpa [#allocation10], 0 }
   0xa   :  { %19 = vsyncpa [#allocation13], 0 }
   0xb   :  { %20 = vsyncpa [#allocation5], 0 }
   0xc   :  { %22 = vsyncpa [#allocation5 + $0x1], 0  ;;  %s4834_s24 = smov 0   ;;  %s4836_s25 = smov 0  }
   0xd   :  { %s4838_s26 = smov 0   ;;  %s4840_s27 = smov 0  }
   0xe LB: > { %5136 = sst [smem:[#allocation21_spill]] %s4780_s26  ;;  %s4858_s8 = sadd.s32 4294967295, %s4784_s27   ;;  %s4784_s27 = sphi %s4840_s27, %s5154_s27   ;;  %s4780_s26 = sphi %s4838_s26, %s5151_s26   ;;  %s4776_s25 = sphi %s4836_s25, %s5153_s25   ;;  %s4772_s24 = sphi %s4834_s24, %s5152_s24  }
   0xf   : > { %s5137_s2 = sld [smem:[#allocation23_spill]]  ;;  %p3083_p0 = scmp.ge.s32.totalorder %s4784_s27, 1 }
  0x10   : > { %p49_p1 = scmp.eq.s32.totalorder %s4858_s8, 0  ;;  %p216_p2 = scmp.lt.s32.totalorder %s4784_s27, 3 }
  0x11   : > { %s4786_s10 = smov [#allocation8]   ;;  %s5139_s3 = sld [smem:[#allocation24_spill]] }
  0x12   : > { %p4863_p3 = pnand %p3083_p0, %p216_p2  ;;  %s229_s11 = sshll.u32 %s4786_s10, 4  ;;  %s230_s11 = int_to_ptr.vmem [resolvable:$true] %s229_s11 }
  0x13   : > { %s5141_s4 = sld [smem:[#allocation25_spill]]  ;;  %s4787_s19 = smov [#allocation9]  }
  0x14   : > { %p4415_p4 = pneg %p4863_p3  ;;  %s243_s20 = sshll.u32 %s4787_s19, 4  ;;  %s244_s20 = int_to_ptr.vmem [resolvable:$true] %s243_s20 }
  0x15   : > { %s227_s30 = sshll.u32 %s5137_s2, 4  ;;  %s4788_s21 = smov 512   ;;  %s228_s30 = int_to_ptr.hbm [resolvable:$true] %s227_s30 }
  0x16   : > { %p4875_p6 = pnand %p4415_p4, %p49_p1  ;;  %s4789_s22 = smov 32  }
  0x17   : > { %s241_s14 = sshll.u32 %s5139_s3, 4  ;;  %s5142_s5 = sld [smem:[#allocation26_spill]]  ;;  %s242_s14 = int_to_ptr.hbm [resolvable:$true] %s241_s14 }
  0x18   : > { %4418 = dma.hbm_to_vmem [thread:$0]  (!%p4875_p6), %s228_s30, 8192, %s230_s11, [#allocation7], %s4788_s21, %s4788_s21, %s4789_s22  }
  0x19   : > { %s255_s18 = sshll.u32 %s5141_s4, 4  ;;  %s4790_s10 = smov [#allocation11]   ;;  %s256_s18 = int_to_ptr.hbm [resolvable:$true] %s255_s18 }
  0x1a   : > { %4421 = dma.hbm_to_vmem [thread:$0]  (!%p4875_p6), %s242_s14, 8192, %s244_s20, [#allocation10], %s4788_s21, %s4788_s21, %s4789_s22  }
  0x1b   : > { %s257_s12 = sshll.u32 %s4790_s10, 4  ;;  %s4791_s30 = smov [#allocation12]   ;;  %s258_s12 = int_to_ptr.vmem [resolvable:$true] %s257_s12 }
  0x1c   : > { %4424 = dma.hbm_to_vmem [thread:$0]  (!%p4875_p6), %s256_s18, 8192, %s258_s12, [#allocation10], %s4788_s21, %s4788_s21, %s4789_s22  }
  0x1d   : > { %s269_s29 = sshll.u32 %s5142_s5, 4  ;;  %s271_s11 = sshll.u32 %s4791_s30, 4  ;;  %s270_s29 = int_to_ptr.hbm [resolvable:$true] %s269_s29  ;;  %s272_s11 = int_to_ptr.vmem [resolvable:$true] %s271_s11 }
  0x1e   : > { %s4792_s13 = smov 64   ;;  %s4793_s14 = smov 4  }
  0x1f   : > { %4427 = dma.hbm_to_vmem [thread:$0]  (!%p4875_p6), %s270_s29, 8192, %s272_s11, [#allocation13], %s4792_s13, %s4792_s13, %s4793_s14  }
  0x20   : > { %s3082_s16 = sadd.s32 4294967294, %s4784_s27   ;;  %s4895_s17 = sadd.s32 1, %s4784_s27  }
  0x21   : > { %s32_s19 = ssub.s32 %s4784_s27, %s4895_s17  ;;  %s35_s20 = sadd.s32 1, %s4780_s26 }
  0x22   : > { %p33_p7 = scmp.eq.s32.totalorder %s32_s19, 0  ;;  %p42_p8 = scmp.ne.s32.totalorder %s4780_s26, %s4776_s25 }
  0x23   : > { %p43_p9 = scmp.eq.s32.totalorder %s4784_s27, 0  ;;  %p48_p10 = scmp.ne.s32.totalorder %s4776_s25, %s4772_s24 }
  0x24   : > { %s4906_s18 = scalar_select %p33_p7, %s4780_s26, %s35_s20  }
  0x25   : > { %p4908_p11 = por %p43_p9, %p42_p8  ;;  %p4914_p12 = por %p49_p1, %p48_p10 }
  0x26   : > { %5143 = sst [smem:[#allocation22_spill]] %s4906_s18  ;;  %p203_p13 = scmp.eq.s32.totalorder %s4858_s8, 1 }
  0x27   : > { %p209_p0 = scmp.eq.s32.totalorder %s3082_s16, 1  ;;  %p4443_p2 = scmp.lt.s32.totalorder %s4784_s27, 2 }
  0x28   : > { %s288_s22 = sand.u32 1, %s4780_s26   ;;  %p4921_p4 = por %p203_p13, %p42_p8 }
  0x29   : > { %p4925_p6 = por %p209_p0, %p48_p10  ;;  %s4929_s29 = sshll.u32 %s288_s22, 2 }
  0x2a   : > { %s3090_s10 = sshll.u32 %s4784_s27, 2  ;;  %s292_s13 = scalar_lea.vmem [#allocation3], %s4929_s29 }
  0x2b   : > { %s296_s11 = scalar_lea.hbm %s5123_s0, %s3090_s10  ;;  %s300_s14 = sshll.u32 %s292_s13, 4  ;;  %s301_s14 = int_to_ptr.vmem [resolvable:$true] %s300_s14 }
  0x2c   : > { %s298_s16 = sshll.u32 %s296_s11, 4  ;;  %p4938_p7 = pnand %p4443_p2, %p4908_p11  ;;  %s299_s16 = int_to_ptr.hbm [resolvable:$true] %s298_s16 }
  0x2d   : > { %s315_s3 = scalar_lea.hbm %s5124_s1, %s3090_s10  ;;  %s307_s4 = sand.u32 1, %s4784_s27  }
  0x2e   : > { %s289_s5 = scalar_lea.sflag [#allocation4], %s288_s22  ;;  %s4642_s12 = sshra.s32 %s299_s16, 4  ;;  %s4643_s12 = int_to_ptr.hbm [resolvable:$true] %s4642_s12 }
  0x2f   : > { %s4644_s30 = scalar_lea.hbm %s4643_s12, 4  ;;  %p4646_p9 = pneg %p4938_p7 }
  0x30   : > { %p4645_p8 = scmp.ne.s32.totalorder %s4643_s12, %s4644_s30  ;;  %s4649_s13 = scalar_lea.hbm %s5123_s0, 8 }
  0x31   : > { %p4650_p13 = scmp.lt.s32.totalorder %s4643_s12, %s5123_s0  ;;  %p4651_p0 = scmp.lt.s32.totalorder %s4649_s13, %s4644_s30 }
  0x32   : > { %p4647_p10 = pnand %p4646_p9, %p4645_p8 }
  0x33   : > { %p4652_p2 = por %p4651_p0, %p4650_p13 }
  0x34   : > { %p4648_p11 = pneg %p4647_p10 }
  0x36   : > { %p4653_p5 = pnand %p4652_p2, %p4648_p11 }
  0x38   : > { %4656 = shalt.err (!%p4653_p5)
}
  0x39   : > { %4431 = dma.hbm_to_vmem [thread:$0]  (!%p4938_p7), %s299_s16, 64, %s301_s14, %s289_s5  }
  0x3a   : > { %s317_s22 = sshll.u32 %s315_s3, 4  ;;  %s311_s10 = scalar_lea.vmem [#allocation6], %s4929_s29  ;;  %s318_s22 = int_to_ptr.hbm [resolvable:$true] %s317_s22 }
  0x3b   : > { %s319_s18 = sshll.u32 %s311_s10, 4  ;;  %s308_s21 = scalar_lea.sflag [#allocation7], %s307_s4  ;;  %s320_s18 = int_to_ptr.vmem [resolvable:$true] %s319_s18 }
  0x3c   : > { %s4672_s11 = sshra.s32 %s318_s22, 4  ;;  %s4679_s13 = scalar_lea.hbm %s5124_s1, 8  ;;  %s4673_s11 = int_to_ptr.hbm [resolvable:$true] %s4672_s11 }
  0x3d   : > { %s4674_s26 = scalar_lea.hbm %s4673_s11, 4  ;;  %p4680_p5 = scmp.lt.s32.totalorder %s4673_s11, %s5124_s1 }
  0x3e   : > { %p4675_p8 = scmp.ne.s32.totalorder %s4673_s11, %s4674_s26  ;;  %p4681_p13 = scmp.lt.s32.totalorder %s4679_s13, %s4674_s26 }
  0x40   : > { %p4677_p10 = pnand %p4675_p8, %p4646_p9  ;;  %p4682_p0 = por %p4681_p13, %p4680_p5 }
  0x42   : > { %p4678_p11 = pneg %p4677_p10 }
  0x44   : > { %p4683_p2 = pnand %p4682_p0, %p4678_p11 }
  0x46   : > { %4686 = shalt.err (!%p4683_p2)
}
  0x47   : > { %4434 = dma.hbm_to_vmem [thread:$0]  (!%p4938_p7), %s318_s22, 64, %s320_s18, %s308_s21  }
  0x48   : > { %328 = sbr.rel (%p4863_p3) target bundleno = 923 (0x39b), region = 48  ;;  %s4974_s3 = sand.u32 (!%p4863_p3), 1, %s4776_s25  }
  0x49   : > { %s3094_s4 = sshll.u32 (!%p4863_p3), %s4974_s3, 2  ;;  %s331_s29 = scalar_lea.sflag (!%p4863_p3), [#allocation4], %s4974_s3 }
  0x4a   : > { %s4978_s14 = scalar_lea.vmem (!%p4863_p3), [#allocation3], %s3094_s4 }
  0x4d   : > { %4747 = dma.done.wait (%p4914_p12), %s331_s29, 64  }
  0x4e   : > { %4749 = vsyncadd (%p4914_p12), %s331_s29, 4294967232  ;;  %s340_s26 = sand.u32 1, %s4858_s8   ;;  %s4985_s18 = scalar_lea.vmem [#allocation6], %s3094_s4 }
  0x4f   : > { %s341_s9 = scalar_lea.sflag [#allocation7], %s340_s26 }
  0x50   : > { %4751 = dma.done.wait (%p4914_p12), %s341_s9, 64  }
  0x51   : > { %4753 = vsyncadd (%p4914_p12), %s341_s9, 4294967232 }
  0x52   : > { %4755 = dma.done.wait (%p49_p1), [#allocation7], 8192  }
  0x53   : > { %4757 = vsyncadd (%p49_p1), [#allocation7], 4294959104 }
  0x54   : > { %4759 = dma.done.wait (%p49_p1), [#allocation10], 16384  }
  0x55   : > { %4761 = vsyncadd (%p49_p1), [#allocation10], 4294950912 }
  0x56   : > { %4763 = dma.done.wait (%p49_p1), [#allocation13], 8192  }
  0x57   : > { %4765 = vsyncadd (%p49_p1), [#allocation13], 4294959104  ;;  %v3327_v0 = vld [vmem:[#allocation8 + $0x1c0] sm:$0xf]  ;;  %v4193_v2 = vld [vmem:[#allocation8 + $0x1c4] sm:$0xf] }
  0x58   : > { %v4197_v1 = vld [vmem:[#allocation8 + $0x1dc] sm:$0xf0]  ;;  %v3329_v4 = vld [vmem:[#allocation8 + $0x1e0] sm:$0xf0]  ;;  %v3335_v5 = vld [vmem:[#allocation8 + $0x1c8] sm:$0xf] }
  0x59   : > { %v3328_v3 = vor.u32 %v4197_v1, %v3327_v0  ;;  %v4198_v6 = vld [vmem:[#allocation8 + $0x1e4] sm:$0xf0]  ;;  %v3332_v7 = vor.u32 %v4193_v2, %v3329_v4  ;;  %v4194_v9 = vld [vmem:[#allocation8 + $0x1cc] sm:$0xf]  ;;  %v3295_v11 = vld [vmem:[#allocation8 + $0x180] sm:$0xf] }
  0x5a   : > { %v3336_v8 = vor.u32 %v4198_v6, %v3335_v5  ;;  %v3337_v10 = vld [vmem:[#allocation8 + $0x1e8] sm:$0xf0]  ;;  %v4189_v13 = vld [vmem:[#allocation8 + $0x19c] sm:$0xf0]  ;;  %v4185_v14 = vld [vmem:[#allocation8 + $0x184] sm:$0xf] }
  0x5b   : > { %788 = vmatpush.bf16.msra.mxu0 %v3328_v3  ;;  %v3340_v12 = vor.u32 %v4194_v9, %v3337_v10  ;;  %v3297_v15 = vld [vmem:[#allocation8 + $0x1a0] sm:$0xf0]  ;;  %801 = vmatpush.bf16.msra.mxu1 %v3332_v7  ;;  %v3296_v16 = vor.u32 %v4189_v13, %v3295_v11  ;;  %v3303_v18 = vld [vmem:[#allocation8 + $0x188] sm:$0xf]  ;;  %v4186_v20 = vld [vmem:[#allocation8 + $0x18c] sm:$0xf] }
  0x5c   : > { %814 = vmatpush.bf16.msra.mxu2 %v3336_v8  ;;  %v3300_v17 = vor.u32 %v4185_v14, %v3297_v15  ;;  %v4190_v19 = vld [vmem:[#allocation8 + $0x1a4] sm:$0xf0]  ;;  %v3305_v22 = vld [vmem:[#allocation8 + $0x1a8] sm:$0xf0]  ;;  %v3263_v23 = vld [vmem:[#allocation8 + $0x140] sm:$0xf] }
  0x5d   : > { %827 = vmatpush.bf16.msra.mxu3 %v3340_v12  ;;  %v3304_v21 = vor.u32 %v4190_v19, %v3303_v18  ;;  %v4181_v24 = vld [vmem:[#allocation8 + $0x15c] sm:$0xf0]  ;;  %v3308_v25 = vor.u32 %v4186_v20, %v3305_v22  ;;  %v4177_v26 = vld [vmem:[#allocation8 + $0x144] sm:$0xf]  ;;  %v3271_v28 = vld [vmem:[#allocation8 + $0x148] sm:$0xf] }
  0x5e   : > { %v3265_v27 = vld [vmem:[#allocation8 + $0x160] sm:$0xf0]  ;;  %v3264_v29 = vor.u32 %v4181_v24, %v3263_v23  ;;  %v4182_v30 = vld [vmem:[#allocation8 + $0x164] sm:$0xf0]  ;;  %v4178_v31 = vld [vmem:[#allocation8 + $0x14c] sm:$0xf] }
  0x5f   : > { %789 = vmatpush.bf16.msra.mxu0 %v3296_v16  ;;  %v3273_v32 = vld [vmem:[#allocation8 + $0x168] sm:$0xf0]  ;;  %802 = vmatpush.bf16.msra.mxu1 %v3300_v17  ;;  %v3268_v33 = vor.u32 %v4177_v26, %v3265_v27  ;;  %v3272_v34 = vor.u32 %v4182_v30, %v3271_v28  ;;  %v3231_v35 = vld [vmem:[#allocation8 + $0x100] sm:$0xf]  ;;  %v4169_v37 = vld [vmem:[#allocation8 + $0x104] sm:$0xf] }
  0x60   : > { %815 = vmatpush.bf16.msra.mxu2 %v3304_v21  ;;  %v4173_v36 = vld [vmem:[#allocation8 + $0x11c] sm:$0xf0]  ;;  %v3276_v38 = vor.u32 %v4178_v31, %v3273_v32  ;;  %v3233_v39 = vld [vmem:[#allocation8 + $0x120] sm:$0xf0]  ;;  %v3239_v40 = vld [vmem:[#allocation8 + $0x108] sm:$0xf] }
  0x61   : > { %828 = vmatpush.bf16.msra.mxu3 %v3308_v25  ;;  %v4174_v41 = vld [vmem:[#allocation8 + $0x124] sm:$0xf0]  ;;  %v4170_v42 = vld [vmem:[#allocation8 + $0x10c] sm:$0xf]  ;;  %v3232_v44 = vor.u32 %v4173_v36, %v3231_v35  ;;  %v3236_v45 = vor.u32 %v4169_v37, %v3233_v39  ;;  %v3199_v47 = vld [vmem:[#allocation8 + $0xc0] sm:$0xf] }
  0x62   : > { %v3241_v43 = vld [vmem:[#allocation8 + $0x128] sm:$0xf0]  ;;  %v3240_v46 = vor.u32 %v4174_v41, %v3239_v40  ;;  %v4165_v48 = vld [vmem:[#allocation8 + $0xdc] sm:$0xf0]  ;;  %v4161_v49 = vld [vmem:[#allocation8 + $0xc4] sm:$0xf] }
  0x63   : > { %790 = vmatpush.bf16.msra.mxu0 %v3264_v29  ;;  %803 = vmatpush.bf16.msra.mxu1 %v3268_v33  ;;  %v3244_v50 = vor.u32 %v4170_v42, %v3241_v43  ;;  %v3201_v51 = vld [vmem:[#allocation8 + $0xe0] sm:$0xf0]  ;;  %v3207_v52 = vld [vmem:[#allocation8 + $0xc8] sm:$0xf]  ;;  %v4162_v54 = vld [vmem:[#allocation8 + $0xcc] sm:$0xf]  ;;  %v3200_v56 = vor.u32 %v4165_v48, %v3199_v47 }
  0x64   : > { %816 = vmatpush.bf16.msra.mxu2 %v3272_v34  ;;  %v4166_v53 = vld [vmem:[#allocation8 + $0xe4] sm:$0xf0]  ;;  %v3209_v55 = vld [vmem:[#allocation8 + $0xe8] sm:$0xf0]  ;;  %v3204_v57 = vor.u32 %v4161_v49, %v3201_v51  ;;  %v3167_v59 = vld [vmem:[#allocation8 + $0x80] sm:$0xf] }
  0x65   : > { %829 = vmatpush.bf16.msra.mxu3 %v3276_v38  ;;  %v3208_v58 = vor.u32 %v4166_v53, %v3207_v52  ;;  %v4157_v60 = vld [vmem:[#allocation8 + $0x9c] sm:$0xf0]  ;;  %v4153_v61 = vld [vmem:[#allocation8 + $0x84] sm:$0xf]  ;;  %v3212_v62 = vor.u32 %v4162_v54, %v3209_v55  ;;  %v3175_v0 = vld [vmem:[#allocation8 + $0x88] sm:$0xf] }
  0x66   : > { %v3169_v63 = vld [vmem:[#allocation8 + $0xa0] sm:$0xf0]  ;;  %v4158_v1 = vld [vmem:[#allocation8 + $0xa4] sm:$0xf0]  ;;  %v4154_v2 = vld [vmem:[#allocation8 + $0x8c] sm:$0xf]  ;;  %v3168_v4 = vor.u32 %v4157_v60, %v3167_v59 }
  0x67   : > { %791 = vmatpush.bf16.msra.mxu0 %v3232_v44  ;;  %804 = vmatpush.bf16.msra.mxu1 %v3236_v45  ;;  %v3177_v3 = vld [vmem:[#allocation8 + $0xa8] sm:$0xf0]  ;;  %v3172_v5 = vor.u32 %v4153_v61, %v3169_v63  ;;  %v3176_v6 = vor.u32 %v4158_v1, %v3175_v0  ;;  %v3135_v7 = vld [vmem:[#allocation8 + $0x40] sm:$0xf]  ;;  %v4145_v9 = vld [vmem:[#allocation8 + $0x44] sm:$0xf] }
  0x68   : > { %817 = vmatpush.bf16.msra.mxu2 %v3240_v46  ;;  %v4149_v8 = vld [vmem:[#allocation8 + $0x5c] sm:$0xf0]  ;;  %v3180_v10 = vor.u32 %v4154_v2, %v3177_v3  ;;  %v3137_v11 = vld [vmem:[#allocation8 + $0x60] sm:$0xf0]  ;;  %v3143_v12 = vld [vmem:[#allocation8 + $0x48] sm:$0xf] }
  0x69   : > { %830 = vmatpush.bf16.msra.mxu3 %v3244_v50  ;;  %v4150_v13 = vld [vmem:[#allocation8 + $0x64] sm:$0xf0]  ;;  %v4146_v14 = vld [vmem:[#allocation8 + $0x4c] sm:$0xf]  ;;  %v3136_v16 = vor.u32 %v4149_v8, %v3135_v7  ;;  %v3103_v17 = vld [vmem:[#allocation8] sm:$0xf]  ;;  %v3140_v19 = vor.u32 %v4145_v9, %v3137_v11 }
  0x6a   : > { %v3145_v15 = vld [vmem:[#allocation8 + $0x68] sm:$0xf0]  ;;  %v4141_v18 = vld [vmem:[#allocation8 + $0x1c] sm:$0xf0]  ;;  %v3144_v20 = vor.u32 %v4150_v13, %v3143_v12  ;;  %v4137_v21 = vld [vmem:[#allocation8 + $0x4] sm:$0xf] }
  0x6b   : > { %792 = vmatpush.bf16.msra.mxu0 %v3200_v56  ;;  %805 = vmatpush.bf16.msra.mxu1 %v3204_v57  ;;  %v3105_v22 = vld [vmem:[#allocation8 + $0x20] sm:$0xf0]  ;;  %v3343_v23 = vld [vmem:[#allocation8 + $0x1d0] sm:$0xf]  ;;  %v3148_v24 = vor.u32 %v4146_v14, %v3145_v15  ;;  %v4195_v26 = vld [vmem:[#allocation8 + $0x1d4] sm:$0xf]  ;;  %v3104_v31 = vor.u32 %v4141_v18, %v3103_v17 }
  0x6c   : > { %818 = vmatpush.bf16.msra.mxu2 %v3208_v58  ;;  %v4199_v25 = vld [vmem:[#allocation8 + $0x1ec] sm:$0xf0]  ;;  %v3345_v27 = vld [vmem:[#allocation8 + $0x1f0] sm:$0xf0]  ;;  %v3111_v28 = vld [vmem:[#allocation8 + $0x8] sm:$0xf]  ;;  %v3108_v35 = vor.u32 %v4137_v21, %v3105_v22 }
  0x6d   : > { %831 = vmatpush.bf16.msra.mxu3 %v3212_v62  ;;  %v4142_v29 = vld [vmem:[#allocation8 + $0x24] sm:$0xf0]  ;;  %v4138_v30 = vld [vmem:[#allocation8 + $0xc] sm:$0xf]  ;;  %v3351_v33 = vld [vmem:[#allocation8 + $0x1d8] sm:$0xf]  ;;  %v3344_v36 = vor.u32 %v4199_v25, %v3343_v23  ;;  %v3348_v39 = vor.u32 %v4195_v26, %v3345_v27 }
  0x6e   : > { %v3113_v32 = vld [vmem:[#allocation8 + $0x28] sm:$0xf0]  ;;  %v4200_v34 = vld [vmem:[#allocation8 + $0x1f4] sm:$0xf0]  ;;  %v4196_v37 = vld [vmem:[#allocation8 + $0x1dc] sm:$0xf]  ;;  %v3112_v40 = vor.u32 %v4142_v29, %v3111_v28 }
  0x6f   : > { %793 = vmatpush.bf16.msra.mxu0 %v3168_v4  ;;  %806 = vmatpush.bf16.msra.mxu1 %v3172_v5  ;;  %v3353_v38 = vld [vmem:[#allocation8 + $0x1f8] sm:$0xf0]  ;;  %v3311_v41 = vld [vmem:[#allocation8 + $0x190] sm:$0xf]  ;;  %v3116_v43 = vor.u32 %v4138_v30, %v3113_v32  ;;  %v3352_v44 = vor.u32 %v4200_v34, %v3351_v33  ;;  %v4187_v45 = vld [vmem:[#allocation8 + $0x194] sm:$0xf] }
  0x70   : > { %819 = vmatpush.bf16.msra.mxu2 %v3176_v6  ;;  %v4191_v42 = vld [vmem:[#allocation8 + $0x1ac] sm:$0xf0]  ;;  %v3313_v46 = vld [vmem:[#allocation8 + $0x1b0] sm:$0xf0]  ;;  %v3356_v47 = vor.u32 %v4196_v37, %v3353_v38  ;;  %v3319_v48 = vld [vmem:[#allocation8 + $0x198] sm:$0xf] }
  0x71   : > { %832 = vmatpush.bf16.msra.mxu3 %v3180_v10  ;;  %v4192_v49 = vld [vmem:[#allocation8 + $0x1b4] sm:$0xf0]  ;;  %v3312_v50 = vor.u32 %v4191_v42, %v3311_v41  ;;  %v4188_v51 = vld [vmem:[#allocation8 + $0x19c] sm:$0xf]  ;;  %v3316_v53 = vor.u32 %v4187_v45, %v3313_v46  ;;  %v3279_v54 = vld [vmem:[#allocation8 + $0x150] sm:$0xf] }
  0x72   : > { %v3321_v52 = vld [vmem:[#allocation8 + $0x1b8] sm:$0xf0]  ;;  %v4183_v55 = vld [vmem:[#allocation8 + $0x16c] sm:$0xf0]  ;;  %v3320_v56 = vor.u32 %v4192_v49, %v3319_v48  ;;  %v4179_v57 = vld [vmem:[#allocation8 + $0x154] sm:$0xf] }
  0x73   : > { %794 = vmatpush.bf16.msra.mxu0 %v3136_v16  ;;  %807 = vmatpush.bf16.msra.mxu1 %v3140_v19  ;;  %v3281_v58 = vld [vmem:[#allocation8 + $0x170] sm:$0xf0]  ;;  %v3324_v60 = vor.u32 %v4188_v51, %v3321_v52  ;;  %v3287_v61 = vld [vmem:[#allocation8 + $0x158] sm:$0xf]  ;;  %v3280_v63 = vor.u32 %v4183_v55, %v3279_v54  ;;  %v4180_v0 = vld [vmem:[#allocation8 + $0x15c] sm:$0xf] }
  0x74   : > { %820 = vmatpush.bf16.msra.mxu2 %v3144_v20  ;;  %v5004_v59 = vld [vmem:[%s4978_s14] sm:$0xf]  ;;  %v4184_v62 = vld [vmem:[#allocation8 + $0x174] sm:$0xf0]  ;;  %v3289_v1 = vld [vmem:[#allocation8 + $0x178] sm:$0xf0]  ;;  %v3284_v2 = vor.u32 %v4179_v57, %v3281_v58 }
  0x75   : > { %833 = vmatpush.bf16.msra.mxu3 %v3148_v24  ;;  %v3247_v3 = vld [vmem:[#allocation8 + $0x110] sm:$0xf]  ;;  %v3288_v5 = vor.u32 %v4184_v62, %v3287_v61  ;;  %v4171_v6 = vld [vmem:[#allocation8 + $0x114] sm:$0xf]  ;;  %v3292_v8 = vor.u32 %v4180_v0, %v3289_v1  ;;  %v3255_v9 = vld [vmem:[#allocation8 + $0x118] sm:$0xf] }
  0x76   : > { %v4175_v4 = vld [vmem:[#allocation8 + $0x12c] sm:$0xf0]  ;;  %v3249_v7 = vld [vmem:[#allocation8 + $0x130] sm:$0xf0]  ;;  %v4176_v10 = vld [vmem:[#allocation8 + $0x134] sm:$0xf0] }
  0x77   : > { %795 = vmatpush.bf16.msra.mxu0 %v3104_v31  ;;  %808 = vmatpush.bf16.msra.mxu1 %v3108_v35  ;;  %v3248_v11 = vor.u32 %v4175_v4, %v3247_v3  ;;  %v4172_v12 = vld [vmem:[#allocation8 + $0x11c] sm:$0xf]  ;;  %v3252_v14 = vor.u32 %v4171_v6, %v3249_v7  ;;  %v3215_v15 = vld [vmem:[#allocation8 + $0xd0] sm:$0xf]  ;;  %v3256_v17 = vor.u32 %v4176_v10, %v3255_v9  ;;  %v4163_v18 = vld [vmem:[#allocation8 + $0xd4] sm:$0xf] }
  0x78   : > { %821 = vmatpush.bf16.msra.mxu2 %v3112_v40  ;;  %v3257_v13 = vld [vmem:[#allocation8 + $0x138] sm:$0xf0]  ;;  %v4167_v16 = vld [vmem:[#allocation8 + $0xec] sm:$0xf0]  ;;  %v3217_v19 = vld [vmem:[#allocation8 + $0xf0] sm:$0xf0] }
  0x79   : > { %834 = vmatpush.bf16.msra.mxu3 %v3116_v43  ;;  %v3260_v20 = vor.u32 %v4172_v12, %v3257_v13  ;;  %v3223_v21 = vld [vmem:[#allocation8 + $0xd8] sm:$0xf]  ;;  %v3216_v23 = vor.u32 %v4167_v16, %v3215_v15  ;;  %v4164_v24 = vld [vmem:[#allocation8 + $0xdc] sm:$0xf]  ;;  %v3220_v26 = vor.u32 %v4163_v18, %v3217_v19  ;;  %v3183_v27 = vld [vmem:[#allocation8 + $0x90] sm:$0xf] }
  0x7a   : > { %796 = vmatmul.bf16.vlgmr.msra.gmra.mxu0 %v5004_v59  ;;  %809 = vmatmul.bf16.vlgmr.msra.gmra.mxu1 %v5004_v59  ;;  %v4168_v22 = vld [vmem:[#allocation8 + $0xf4] sm:$0xf0]  ;;  %v3225_v25 = vld [vmem:[#allocation8 + $0xf8] sm:$0xf0]  ;;  %v4159_v28 = vld [vmem:[#allocation8 + $0xac] sm:$0xf0] }
  0x7b   : > { %840 = vmatpush.bf16.msrb.mxu0 %v3344_v36  ;;  %853 = vmatpush.bf16.msrb.mxu1 %v3348_v39  ;;  %v3224_v29 = vor.u32 %v4168_v22, %v3223_v21  ;;  %v4155_v30 = vld [vmem:[#allocation8 + $0x94] sm:$0xf]  ;;  %v3228_v32 = vor.u32 %v4164_v24, %v3225_v25  ;;  %v3191_v33 = vld [vmem:[#allocation8 + $0x98] sm:$0xf]  ;;  %v3184_v35 = vor.u32 %v4159_v28, %v3183_v27  ;;  %v4156_v36 = vld [vmem:[#allocation8 + $0x9c] sm:$0xf] }
  0x7c   : > { %866 = vmatpush.bf16.msrb.mxu2 %v3352_v44  ;;  %835 = vmatmul.bf16.vlgmr.msra.gmra.mxu3 %v5004_v59  ;;  %v3185_v31 = vld [vmem:[#allocation8 + $0xb0] sm:$0xf0]  ;;  %v4160_v34 = vld [vmem:[#allocation8 + $0xb4] sm:$0xf0]  ;;  %v3193_v37 = vld [vmem:[#allocation8 + $0xb8] sm:$0xf0] }
  0x7d   : > { %879 = vmatpush.bf16.msrb.mxu3 %v3356_v47  ;;  %822 = vmatmul.bf16.vlgmr.msra.gmra.mxu2 %v5004_v59  ;;  %v3188_v38 = vor.u32 %v4155_v30, %v3185_v31  ;;  %v3151_v39 = vld [vmem:[#allocation8 + $0x50] sm:$0xf]  ;;  %v3192_v41 = vor.u32 %v4160_v34, %v3191_v33  ;;  %v4147_v42 = vld [vmem:[#allocation8 + $0x54] sm:$0xf]  ;;  %v3196_v44 = vor.u32 %v4156_v36, %v3193_v37  ;;  %v3159_v45 = vld [vmem:[#allocation8 + $0x58] sm:$0xf] }
  0x7e   : > { %v4151_v40 = vld [vmem:[#allocation8 + $0x6c] sm:$0xf0]  ;;  %v3153_v43 = vld [vmem:[#allocation8 + $0x70] sm:$0xf0]  ;;  %v4152_v46 = vld [vmem:[#allocation8 + $0x74] sm:$0xf0] }
  0x7f   : > { %841 = vmatpush.bf16.msrb.mxu0 %v3312_v50  ;;  %854 = vmatpush.bf16.msrb.mxu1 %v3316_v53  ;;  %v4148_v47 = vld [vmem:[#allocation8 + $0x5c] sm:$0xf]  ;;  %v3152_v48 = vor.u32 %v4151_v40, %v3151_v39  ;;  %v3119_v50 = vld [vmem:[#allocation8 + $0x10] sm:$0xf]  ;;  %v3156_v52 = vor.u32 %v4147_v42, %v3153_v43  ;;  %v4139_v53 = vld [vmem:[#allocation8 + $0x14] sm:$0xf] }
  0x80   : > { %867 = vmatpush.bf16.msrb.mxu2 %v3320_v56  ;;  %v3161_v49 = vld [vmem:[#allocation8 + $0x78] sm:$0xf0]  ;;  %v4143_v51 = vld [vmem:[#allocation8 + $0x2c] sm:$0xf0]  ;;  %v3121_v54 = vld [vmem:[#allocation8 + $0x30] sm:$0xf0]  ;;  %v3160_v56 = vor.u32 %v4152_v46, %v3159_v45 }
  0x81   : > { %880 = vmatpush.bf16.msrb.mxu3 %v3324_v60  ;;  %v3583_v55 = vld [vmem:[#allocation9 + $0x1c0] sm:$0xf]  ;;  %v4257_v58 = vld [vmem:[#allocation9 + $0x1c4] sm:$0xf]  ;;  %v3164_v61 = vor.u32 %v4148_v47, %v3161_v49  ;;  %v3127_v62 = vld [vmem:[#allocation8 + $0x18] sm:$0xf]  ;;  %v3120_v1 = vor.u32 %v4143_v51, %v3119_v50 }
  0x82   : > { %v4261_v57 = vld [vmem:[#allocation9 + $0x1dc] sm:$0xf0]  ;;  %v3585_v60 = vld [vmem:[#allocation9 + $0x1e0] sm:$0xf0]  ;;  %v4140_v0 = vld [vmem:[#allocation8 + $0x1c] sm:$0xf] }
  0x83   : > { %842 = vmatpush.bf16.msrb.mxu0 %v3280_v63  ;;  %855 = vmatpush.bf16.msrb.mxu1 %v3284_v2  ;;  %v4144_v63 = vld [vmem:[#allocation8 + $0x34] sm:$0xf0]  ;;  %v3129_v2 = vld [vmem:[#allocation8 + $0x38] sm:$0xf0]  ;;  %v3591_v3 = vld [vmem:[#allocation9 + $0x1c8] sm:$0xf]  ;;  %v3584_v6 = vor.u32 %v4261_v57, %v3583_v55  ;;  %v3588_v9 = vor.u32 %v4257_v58, %v3585_v60 }
  0x84   : > { %868 = vmatpush.bf16.msrb.mxu2 %v3288_v5  ;;  %v4262_v4 = vld [vmem:[#allocation9 + $0x1e4] sm:$0xf0]  ;;  %v3124_v5 = vor.u32 %v4139_v53, %v3121_v54  ;;  %v4258_v7 = vld [vmem:[#allocation9 + $0x1cc] sm:$0xf]  ;;  %v3128_v10 = vor.u32 %v4144_v63, %v3127_v62  ;;  %v4253_v12 = vld [vmem:[#allocation9 + $0x19c] sm:$0xf0]  ;;  %v3132_v13 = vor.u32 %v4140_v0, %v3129_v2 }
  0x85   : > { %881 = vmatpush.bf16.msrb.mxu3 %v3292_v8  ;;  %v3593_v8 = vld [vmem:[#allocation9 + $0x1e8] sm:$0xf0]  ;;  %v4249_v15 = vld [vmem:[#allocation9 + $0x184] sm:$0xf]  ;;  %v3559_v18 = vld [vmem:[#allocation9 + $0x188] sm:$0xf] }
  0x86   : > { %v3553_v16 = vld [vmem:[#allocation9 + $0x1a0] sm:$0xf0]  ;;  %v4254_v19 = vld [vmem:[#allocation9 + $0x1a4] sm:$0xf0]  ;;  %v4250_v21 = vld [vmem:[#allocation9 + $0x18c] sm:$0xf] }
  0x87   : > { %843 = vmatpush.bf16.msrb.mxu0 %v3248_v11  ;;  %856 = vmatpush.bf16.msrb.mxu1 %v3252_v14  ;;  %v3551_v11 = vld [vmem:[#allocation9 + $0x180] sm:$0xf]  ;;  %v3592_v14 = vor.u32 %v4262_v4, %v3591_v3  ;;  %v3561_v22 = vld [vmem:[#allocation9 + $0x1a8] sm:$0xf0]  ;;  %v4241_v27 = vld [vmem:[#allocation9 + $0x144] sm:$0xf] }
  0x88   : > { %869 = vmatpush.bf16.msrb.mxu2 %v3256_v17  ;;  %v3596_v17 = vor.u32 %v4258_v7, %v3593_v8  ;;  %v3519_v24 = vld [vmem:[#allocation9 + $0x140] sm:$0xf]  ;;  %v3521_v28 = vld [vmem:[#allocation9 + $0x160] sm:$0xf0]  ;;  %v3527_v30 = vld [vmem:[#allocation9 + $0x148] sm:$0xf] }
  0x89   : > { %882 = vmatpush.bf16.msrb.mxu3 %v3260_v20  ;;  %v3552_v20 = vor.u32 %v4253_v12, %v3551_v11  ;;  %v4245_v25 = vld [vmem:[#allocation9 + $0x15c] sm:$0xf0]  ;;  %v4246_v31 = vld [vmem:[#allocation9 + $0x164] sm:$0xf0]  ;;  %v4242_v33 = vld [vmem:[#allocation9 + $0x14c] sm:$0xf] }
  0x8a   : > { %v3529_v34 = vld [vmem:[#allocation9 + $0x168] sm:$0xf0]  ;;  %v3487_v36 = vld [vmem:[#allocation9 + $0x100] sm:$0xf]  ;;  %v4233_v39 = vld [vmem:[#allocation9 + $0x104] sm:$0xf] }
  0x8b   : > { %844 = vmatpush.bf16.msrb.mxu0 %v3216_v23  ;;  %857 = vmatpush.bf16.msrb.mxu1 %v3220_v26  ;;  %v3556_v23 = vor.u32 %v4249_v15, %v3553_v16  ;;  %v3560_v26 = vor.u32 %v4254_v19, %v3559_v18  ;;  %v4237_v37 = vld [vmem:[#allocation9 + $0x11c] sm:$0xf0]  ;;  %v3489_v40 = vld [vmem:[#allocation9 + $0x120] sm:$0xf0]  ;;  %v3495_v42 = vld [vmem:[#allocation9 + $0x108] sm:$0xf] }
  0x8c   : > { %870 = vmatpush.bf16.msrb.mxu2 %v3224_v29  ;;  %v3564_v29 = vor.u32 %v4250_v21, %v3561_v22  ;;  %v4238_v43 = vld [vmem:[#allocation9 + $0x124] sm:$0xf0]  ;;  %v4234_v45 = vld [vmem:[#allocation9 + $0x10c] sm:$0xf]  ;;  %v3492_v47 = vor.u32 %v4233_v39, %v3489_v40  ;;  %v4229_v49 = vld [vmem:[#allocation9 + $0xdc] sm:$0xf0] }
  0x8d   : > { %883 = vmatpush.bf16.msrb.mxu3 %v3228_v32  ;;  %v3520_v32 = vor.u32 %v4245_v25, %v3519_v24  ;;  %v3497_v46 = vld [vmem:[#allocation9 + $0x128] sm:$0xf0]  ;;  %v3496_v50 = vor.u32 %v4238_v43, %v3495_v42  ;;  %v4225_v51 = vld [vmem:[#allocation9 + $0xc4] sm:$0xf]  ;;  %v3463_v54 = vld [vmem:[#allocation9 + $0xc8] sm:$0xf] }
  0x8e   : > { %v3500_v53 = vor.u32 %v4234_v45, %v3497_v46  ;;  %v3465_v57 = vld [vmem:[#allocation9 + $0xe8] sm:$0xf0]  ;;  %v3423_v60 = vld [vmem:[#allocation9 + $0x80] sm:$0xf]  ;;  %v4217_v63 = vld [vmem:[#allocation9 + $0x84] sm:$0xf] }
  0x8f   : > { %845 = vmatpush.bf16.msrb.mxu0 %v3184_v35  ;;  %858 = vmatpush.bf16.msrb.mxu1 %v3188_v38  ;;  %v3524_v35 = vor.u32 %v4241_v27, %v3521_v28  ;;  %v3528_v38 = vor.u32 %v4246_v31, %v3527_v30  ;;  %v3425_v0 = vld [vmem:[#allocation9 + $0xa0] sm:$0xf0]  ;;  %v3431_v2 = vld [vmem:[#allocation9 + $0x88] sm:$0xf]  ;;  %v3391_v8 = vld [vmem:[#allocation9 + $0x40] sm:$0xf] }
  0x90   : > { %871 = vmatpush.bf16.msrb.mxu2 %v3192_v41  ;;  %v3532_v41 = vor.u32 %v4242_v33, %v3529_v34  ;;  %v4222_v3 = vld [vmem:[#allocation9 + $0xa4] sm:$0xf0]  ;;  %v3428_v7 = vor.u32 %v4217_v63, %v3425_v0  ;;  %v4209_v11 = vld [vmem:[#allocation9 + $0x44] sm:$0xf]  ;;  %v3401_v18 = vld [vmem:[#allocation9 + $0x68] sm:$0xf0] }
  0x91   : > { %884 = vmatpush.bf16.msrb.mxu3 %v3196_v44  ;;  %v3488_v44 = vor.u32 %v4237_v37, %v3487_v36  ;;  %v3393_v12 = vld [vmem:[#allocation9 + $0x60] sm:$0xf0]  ;;  %v4214_v15 = vld [vmem:[#allocation9 + $0x64] sm:$0xf0]  ;;  %v3359_v19 = vld [vmem:[#allocation9] sm:$0xf] }
  0x92   : > { %v4205_v21 = vld [vmem:[#allocation9 + $0x1c] sm:$0xf0]  ;;  %v4201_v22 = vld [vmem:[#allocation9 + $0x4] sm:$0xf]  ;;  %v3599_v25 = vld [vmem:[#allocation9 + $0x1d0] sm:$0xf] }
  0x93   : > { %846 = vmatpush.bf16.msrb.mxu0 %v3152_v48  ;;  %859 = vmatpush.bf16.msrb.mxu1 %v3156_v52  ;;  %v3455_v48 = vld [vmem:[#allocation9 + $0xc0] sm:$0xf]  ;;  %v3457_v52 = vld [vmem:[#allocation9 + $0xe0] sm:$0xf0]  ;;  %v4259_v27 = vld [vmem:[#allocation9 + $0x1d4] sm:$0xf] }
  0x94   : > { %872 = vmatpush.bf16.msrb.mxu2 %v3160_v56  ;;  %v3456_v55 = vor.u32 %v4229_v49, %v3455_v48  ;;  %v4226_v56 = vld [vmem:[#allocation9 + $0xcc] sm:$0xf]  ;;  %v3460_v58 = vor.u32 %v4225_v51, %v3457_v52  ;;  %v3367_v30 = vld [vmem:[#allocation9 + $0x8] sm:$0xf]  ;;  %v3607_v37 = vld [vmem:[#allocation9 + $0x1d8] sm:$0xf] }
  0x95   : > { %885 = vmatpush.bf16.msrb.mxu3 %v3164_v61  ;;  %v4221_v61 = vld [vmem:[#allocation9 + $0x9c] sm:$0xf0]  ;;  %v4206_v31 = vld [vmem:[#allocation9 + $0x24] sm:$0xf0]  ;;  %v4202_v33 = vld [vmem:[#allocation9 + $0xc] sm:$0xf] }
  0x96   : > { %v3424_v4 = vor.u32 %v4221_v61, %v3423_v60  ;;  %v3369_v34 = vld [vmem:[#allocation9 + $0x28] sm:$0xf0]  ;;  %v3368_v40 = vor.u32 %v4206_v31, %v3367_v30  ;;  %v4255_v42 = vld [vmem:[#allocation9 + $0x1ac] sm:$0xf0]  ;;  %v3569_v45 = vld [vmem:[#allocation9 + $0x1b0] sm:$0xf0] }
  0x97   : > { %847 = vmatpush.bf16.msrb.mxu0 %v3120_v1  ;;  %860 = vmatpush.bf16.msrb.mxu1 %v3124_v5  ;;  %v3468_v1 = vor.u32 %v4226_v56, %v3465_v57  ;;  %v4218_v5 = vld [vmem:[#allocation9 + $0x8c] sm:$0xf]  ;;  %v3372_v43 = vor.u32 %v4202_v33, %v3369_v34  ;;  %v5015_v46 = vld [vmem:[%s4985_s18] sm:$0xf]  ;;  %v4243_v56 = vld [vmem:[#allocation9 + $0x154] sm:$0xf] }
  0x98   : > { %873 = vmatpush.bf16.msrb.mxu2 %v3128_v10  ;;  %v3432_v10 = vor.u32 %v4222_v3, %v3431_v2  ;;  %v4260_v48 = vld [vmem:[#allocation9 + $0x1dc] sm:$0xf]  ;;  %v3575_v51 = vld [vmem:[#allocation9 + $0x198] sm:$0xf]  ;;  %v3537_v57 = vld [vmem:[#allocation9 + $0x170] sm:$0xf0] }
  0x99   : > { %886 = vmatpush.bf16.msrb.mxu3 %v3132_v13  ;;  %v3609_v49 = vld [vmem:[#allocation9 + $0x1f8] sm:$0xf0]  ;;  %v4256_v52 = vld [vmem:[#allocation9 + $0x1b4] sm:$0xf0]  ;;  %v3503_v2 = vld [vmem:[#allocation9 + $0x110] sm:$0xf] }
  0x9a   : > { %848 = vmatmul.bf16.vlgmr.msrb.gmra.mxu0 %v5004_v59  ;;  %861 = vmatmul.bf16.vlgmr.msrb.gmra.mxu1 %v5004_v59  ;;  %v4252_v60 = vld [vmem:[#allocation9 + $0x19c] sm:$0xf]  ;;  %v3543_v63 = vld [vmem:[#allocation9 + $0x158] sm:$0xf]  ;;  %v4239_v3 = vld [vmem:[#allocation9 + $0x12c] sm:$0xf0] }
  0x9b   : > { %1276 = vmatpush.bf16.msra.mxu0 %v3584_v6  ;;  %1289 = vmatpush.bf16.msra.mxu1 %v3588_v9  ;;  %v3433_v6 = vld [vmem:[#allocation9 + $0xa8] sm:$0xf0]  ;;  %v4213_v9 = vld [vmem:[#allocation9 + $0x5c] sm:$0xf0]  ;;  %v3577_v61 = vld [vmem:[#allocation9 + $0x1b8] sm:$0xf0] }
  0x9c   : > { %1302 = vmatpush.bf16.msra.mxu2 %v3592_v14  ;;  %887 = vmatmul.bf16.vlgmr.msrb.gmra.mxu3 %v5004_v59  ;;  %v3436_v13 = vor.u32 %v4218_v5, %v3433_v6  ;;  %v3399_v14 = vld [vmem:[#allocation9 + $0x48] sm:$0xf]  ;;  %v3392_v16 = vor.u32 %v4213_v9, %v3391_v8  ;;  %v4248_v0 = vld [vmem:[#allocation9 + $0x174] sm:$0xf0]  ;;  %v4235_v5 = vld [vmem:[#allocation9 + $0x114] sm:$0xf] }
  0x9d   : > { %1315 = vmatpush.bf16.msra.mxu3 %v3596_v17  ;;  %874 = vmatmul.bf16.vlgmr.msrb.gmra.mxu2 %v5004_v59  ;;  %v4230_v59 = vld [vmem:[#allocation9 + $0xe4] sm:$0xf0]  ;;  %v4210_v17 = vld [vmem:[#allocation9 + $0x4c] sm:$0xf]  ;;  %v3400_v24 = vor.u32 %v4214_v15, %v3399_v14  ;;  %v3505_v6 = vld [vmem:[#allocation9 + $0x130] sm:$0xf0] }
  0x9e   : > { %v3464_v62 = vor.u32 %v4230_v59, %v3463_v54  ;;  %v3404_v28 = vor.u32 %v4210_v17, %v3401_v18  ;;  %v3535_v54 = vld [vmem:[#allocation9 + $0x150] sm:$0xf]  ;;  %v4244_v8 = vld [vmem:[#allocation9 + $0x15c] sm:$0xf]  ;;  %v4227_v17 = vld [vmem:[#allocation9 + $0xd4] sm:$0xf] }
  0x9f   : > { %1277 = vmatpush.bf16.msra.mxu0 %v3552_v20  ;;  %1290 = vmatpush.bf16.msra.mxu1 %v3556_v23  ;;  %v3396_v20 = vor.u32 %v4209_v11, %v3393_v12  ;;  %v3361_v23 = vld [vmem:[#allocation9 + $0x20] sm:$0xf0]  ;;  %v4247_v59 = vld [vmem:[#allocation9 + $0x16c] sm:$0xf0]  ;;  %v3545_v9 = vld [vmem:[#allocation9 + $0x178] sm:$0xf0] }
  0xa0   : > { %1303 = vmatpush.bf16.msra.mxu2 %v3560_v26  ;;  %v4263_v26 = vld [vmem:[#allocation9 + $0x1ec] sm:$0xf0]  ;;  %v3511_v11 = vld [vmem:[#allocation9 + $0x118] sm:$0xf]  ;;  %v3473_v18 = vld [vmem:[#allocation9 + $0xf0] sm:$0xf0] }
  0xa1   : > { %1316 = vmatpush.bf16.msra.mxu3 %v3564_v29  ;;  %v3601_v29 = vld [vmem:[#allocation9 + $0x1f0] sm:$0xf0]  ;;  %v3600_v36 = vor.u32 %v4263_v26, %v3599_v25  ;;  %v4240_v12 = vld [vmem:[#allocation9 + $0x134] sm:$0xf0]  ;;  %v3471_v14 = vld [vmem:[#allocation9 + $0xd0] sm:$0xf]  ;;  %v3476_v25 = vor.u32 %v4227_v17, %v3473_v18 }
  0xa2   : > { %v3604_v39 = vor.u32 %v4259_v27, %v3601_v29  ;;  %v4231_v15 = vld [vmem:[#allocation9 + $0xec] sm:$0xf0]  ;;  %v4219_v29 = vld [vmem:[#allocation9 + $0x94] sm:$0xf]  ;;  %v3481_v33 = vld [vmem:[#allocation9 + $0xf8] sm:$0xf0] }
  0xa3   : > { %1278 = vmatpush.bf16.msra.mxu0 %v3520_v32  ;;  %1291 = vmatpush.bf16.msra.mxu1 %v3524_v35  ;;  %v3360_v32 = vor.u32 %v4205_v21, %v3359_v19  ;;  %v3364_v35 = vor.u32 %v4201_v22, %v3361_v23  ;;  %v3512_v19 = vor.u32 %v4240_v12, %v3511_v11  ;;  %v3513_v21 = vld [vmem:[#allocation9 + $0x138] sm:$0xf0]  ;;  %v3479_v23 = vld [vmem:[#allocation9 + $0xd8] sm:$0xf]  ;;  %v3439_v26 = vld [vmem:[#allocation9 + $0x90] sm:$0xf] }
  0xa4   : > { %1304 = vmatpush.bf16.msra.mxu2 %v3528_v38  ;;  %v4264_v38 = vld [vmem:[#allocation9 + $0x1f4] sm:$0xf0]  ;;  %v3472_v22 = vor.u32 %v4231_v15, %v3471_v14  ;;  %v4223_v27 = vld [vmem:[#allocation9 + $0xac] sm:$0xf0]  ;;  %v3441_v30 = vld [vmem:[#allocation9 + $0xb0] sm:$0xf0] }
  0xa5   : > { %1317 = vmatpush.bf16.msra.mxu3 %v3532_v41  ;;  %v3567_v41 = vld [vmem:[#allocation9 + $0x190] sm:$0xf]  ;;  %v3440_v34 = vor.u32 %v4223_v27, %v3439_v26  ;;  %v4204_v11 = vld [vmem:[#allocation9 + $0x1c] sm:$0xf]  ;;  %v4322_v14 = vld [vmem:[#allocation11 + $0x1cc] sm:$0xf] }
  0xa6   : > { %v3385_v12 = vld [vmem:[#allocation9 + $0x38] sm:$0xf0]  ;;  %v3849_v15 = vld [vmem:[#allocation11 + $0x1e8] sm:$0xf0]  ;;  %v3815_v17 = vld [vmem:[#allocation11 + $0x188] sm:$0xf] }
  0xa7   : > { %1279 = vmatpush.bf16.msra.mxu0 %v3488_v44  ;;  %1292 = vmatpush.bf16.msra.mxu1 %v3492_v47  ;;  %v4251_v44 = vld [vmem:[#allocation9 + $0x194] sm:$0xf]  ;;  %v3608_v47 = vor.u32 %v4264_v38, %v3607_v37  ;;  %v3444_v37 = vor.u32 %v4219_v29, %v3441_v30  ;;  %v3407_v38 = vld [vmem:[#allocation9 + $0x50] sm:$0xf]  ;;  %v4318_v18 = vld [vmem:[#allocation11 + $0x1a4] sm:$0xf0] }
  0xa8   : > { %1305 = vmatpush.bf16.msra.mxu2 %v3496_v50  ;;  %v3568_v50 = vor.u32 %v4255_v42, %v3567_v41  ;;  %v4211_v41 = vld [vmem:[#allocation9 + $0x54] sm:$0xf]  ;;  %v3783_v27 = vld [vmem:[#allocation11 + $0x148] sm:$0xf]  ;;  %v3743_v29 = vld [vmem:[#allocation11 + $0x100] sm:$0xf] }
  0xa9   : > { %1318 = vmatpush.bf16.msra.mxu3 %v3500_v53  ;;  %v3572_v53 = vor.u32 %v4251_v44, %v3569_v45  ;;  %v3409_v42 = vld [vmem:[#allocation9 + $0x70] sm:$0xf0]  ;;  %v4220_v44 = vld [vmem:[#allocation9 + $0x9c] sm:$0xf]  ;;  %v4301_v30 = vld [vmem:[#allocation11 + $0x11c] sm:$0xf0] }
  0xaa   : > { %v3449_v45 = vld [vmem:[#allocation9 + $0xb8] sm:$0xf0]  ;;  %vm1907_vm0 = vcmask 1043456   ;;  %vm1893_vm1 = vcmask 64512   ;;  %s3100_s19 = sshll.u32 %s4974_s3, 3  ;;  %s4134_s20 = sshll.u32 %s4858_s8, 3 }
  0xab   : > { %1280 = vmatpush.bf16.msra.mxu0 %v3456_v55  ;;  %1293 = vmatpush.bf16.msra.mxu1 %v3460_v58  ;;  %v3612_v55 = vor.u32 %v4260_v48, %v3609_v49  ;;  %v3576_v58 = vor.u32 %v4256_v52, %v3575_v51  ;;  %v3375_v48 = vld [vmem:[#allocation9 + $0x10] sm:$0xf]  ;;  %v3415_v49 = vld [vmem:[#allocation9 + $0x58] sm:$0xf]  ;;  %v3412_v51 = vor.u32 %v4211_v41, %v3409_v42  ;;  %v4298_v42 = vld [vmem:[#allocation11 + $0x10c] sm:$0xf]  ;;  %s2946_s21 = scalar_lea.hbm %s5130_s7, %s4134_s20 }
  0xac   : > { %1306 = vmatpush.bf16.msra.mxu2 %v3464_v62  ;;  %v3536_v62 = vor.u32 %v4247_v59, %v3535_v54  ;;  %v4207_v52 = vld [vmem:[#allocation9 + $0x2c] sm:$0xf0]  ;;  %v3377_v54 = vld [vmem:[#allocation9 + $0x30] sm:$0xf0]  ;;  %v3452_v59 = vor.u32 %v4220_v44, %v3449_v45  ;;  %v3719_v45 = vld [vmem:[#allocation11 + $0xc8] sm:$0xf] }
  0xad   : > { %1319 = vmatpush.bf16.msra.mxu3 %v3468_v1  ;;  %v3540_v1 = vor.u32 %v4243_v56, %v3537_v57  ;;  %v3839_v56 = vld [vmem:[#allocation11 + $0x1c0] sm:$0xf]  ;;  %s400_s11 = scalar_lea.vmem [#allocation14], %s3100_s19  ;;  %s2950_s30 = sshll.u32 %s2946_s21, 4  ;;  %s2951_s30 = int_to_ptr.hbm [resolvable:$true] %s2950_s30 }
  0xae   : > { %v4325_v57 = vld [vmem:[#allocation11 + $0x1dc] sm:$0xf0]  ;;  %s2948_s12 = sshll.u32 %s400_s11, 4  ;;  %s2936_s13 = scalar_lea.sflag [#allocation5], %s4974_s3  ;;  %s2949_s12 = int_to_ptr.vmem [resolvable:$true] %s2948_s12 }
  0xaf   : > { %1281 = vmatpush.bf16.msra.mxu0 %v3424_v4  ;;  %1294 = vmatpush.bf16.msra.mxu1 %v3428_v7  ;;  %v3580_v4 = vor.u32 %v4252_v60, %v3577_v61  ;;  %v3544_v7 = vor.u32 %v4248_v0, %v3543_v63  ;;  %v3417_v60 = vld [vmem:[#allocation9 + $0x78] sm:$0xf0]  ;;  %v4321_v61 = vld [vmem:[#allocation11 + $0x1c4] sm:$0xf]  ;;  %v3376_v63 = vor.u32 %v4207_v52, %v3375_v48  ;;  %v3383_v0 = vld [vmem:[#allocation9 + $0x18] sm:$0xf] }
  0xb0   : > { %1307 = vmatpush.bf16.msra.mxu2 %v3432_v10  ;;  %v3504_v10 = vor.u32 %v4239_v3, %v3503_v2  ;;  %v3840_v3 = vor.u32 %v4325_v57, %v3839_v56  ;;  %v3679_v48 = vld [vmem:[#allocation11 + $0x80] sm:$0xf]  ;;  %v3687_v56 = vld [vmem:[#allocation11 + $0x88] sm:$0xf]  ;;  %s4716_s2 = sshra.s32 %s2951_s30, 4  ;;  %s4722_s29 = scalar_lea.hbm %s5130_s7, 16  ;;  %s4717_s2 = int_to_ptr.hbm [resolvable:$true] %s4716_s2 }
  0xb1   : > { %1320 = vmatpush.bf16.msra.mxu3 %v3436_v13  ;;  %v3508_v13 = vor.u32 %v4235_v5, %v3505_v6  ;;  %v4326_v5 = vld [vmem:[#allocation11 + $0x1e4] sm:$0xf0]  ;;  %s4718_s8 = scalar_lea.hbm %s4717_s2, 8  ;;  %p4723_p7 = scmp.lt.s32.totalorder %s4717_s2, %s5130_s7 }
  0xb2   : > { %v4286_v57 = vld [vmem:[#allocation11 + $0xa4] sm:$0xf0]  ;;  %p4719_p1 = scmp.ne.s32.totalorder %s4717_s2, %s4718_s8  ;;  %p4724_p9 = scmp.lt.s32.totalorder %s4722_s29, %s4718_s8 }
  0xb3   : > { %1282 = vmatpush.bf16.msra.mxu0 %v3392_v16  ;;  %1295 = vmatpush.bf16.msra.mxu1 %v3396_v20  ;;  %v3548_v16 = vor.u32 %v4244_v8, %v3545_v9  ;;  %v4236_v20 = vld [vmem:[#allocation9 + $0x11c] sm:$0xf]  ;;  %v4317_v8 = vld [vmem:[#allocation11 + $0x19c] sm:$0xf0] }
  0xb4   : > { %1308 = vmatpush.bf16.msra.mxu2 %v3400_v24  ;;  %v4232_v24 = vld [vmem:[#allocation9 + $0xf4] sm:$0xf0]  ;;  %p4720_p3 = pnand %p4719_p1, %p4921_p4  ;;  %p4725_p8 = por %p4724_p9, %p4723_p7 }
  0xb5   : > { %1321 = vmatpush.bf16.msra.mxu3 %v3404_v28  ;;  %v3516_v28 = vor.u32 %v4236_v20, %v3513_v21  ;;  %v3480_v31 = vor.u32 %v4232_v24, %v3479_v23  ;;  %v3775_v20 = vld [vmem:[#allocation11 + $0x140] sm:$0xf]  ;;  %v3816_v23 = vor.u32 %v4318_v18, %v3815_v17  ;;  %v4314_v24 = vld [vmem:[#allocation11 + $0x18c] sm:$0xf]  ;;  %v3623_v17 = vld [vmem:[#allocation11 + $0x8] sm:$0xf] }
  0xb6   : > { %v4309_v21 = vld [vmem:[#allocation11 + $0x15c] sm:$0xf0]  ;;  %v4274_v18 = vld [vmem:[#allocation11 + $0x4c] sm:$0xf]  ;;  %p4721_p12 = pneg %p4720_p3 }
  0xb7   : > { %1283 = vmatpush.bf16.msra.mxu0 %v3360_v32  ;;  %1296 = vmatpush.bf16.msra.mxu1 %v3364_v35  ;;  %v4228_v32 = vld [vmem:[#allocation9 + $0xdc] sm:$0xf]  ;;  %v3447_v35 = vld [vmem:[#allocation9 + $0x98] sm:$0xf]  ;;  %v3776_v26 = vor.u32 %v4309_v21, %v3775_v20  ;;  %v4270_v21 = vld [vmem:[#allocation11 + $0x24] sm:$0xf0] }
  0xb8   : > { %1309 = vmatpush.bf16.msra.mxu2 %v3368_v40  ;;  %v3484_v40 = vor.u32 %v4228_v32, %v3481_v33  ;;  %v4306_v33 = vld [vmem:[#allocation11 + $0x14c] sm:$0xf]  ;;  %p4726_p10 = pnand %p4725_p8, %p4721_p12 }
  0xb9   : > { %1322 = vmatpush.bf16.msra.mxu3 %v3372_v43 }
  0xba   : > { %1284 = vmatmul.bf16.vlgmr.msra.gmra.mxu0 %v5015_v46  ;;  %1297 = vmatmul.bf16.vlgmr.msra.gmra.mxu1 %v5015_v46 }
  0xbb   : > { %1328 = vmatpush.bf16.msrb.mxu0 %v3600_v36  ;;  %1341 = vmatpush.bf16.msrb.mxu1 %v3604_v39  ;;  %v4224_v36 = vld [vmem:[#allocation9 + $0xb4] sm:$0xf0]  ;;  %v4215_v39 = vld [vmem:[#allocation9 + $0x6c] sm:$0xf0] }
  0xbc   : > { %1354 = vmatpush.bf16.msrb.mxu2 %v3608_v47  ;;  %1323 = vmatmul.bf16.vlgmr.msra.gmra.mxu3 %v5015_v46  ;;  %v3448_v43 = vor.u32 %v4224_v36, %v3447_v35  ;;  %v3408_v47 = vor.u32 %v4215_v39, %v3407_v38  ;;  %v3744_v35 = vor.u32 %v4301_v30, %v3743_v29  ;;  %v3751_v36 = vld [vmem:[#allocation11 + $0x108] sm:$0xf]  ;;  %v3711_v38 = vld [vmem:[#allocation11 + $0xc0] sm:$0xf] }
  0xbd   : > { %1310 = vmatmul.bf16.vlgmr.msra.gmra.mxu2 %v5015_v46  ;;  %1367 = vmatpush.bf16.msrb.mxu3 %v3612_v55  ;;  %v4212_v55 = vld [vmem:[#allocation9 + $0x5c] sm:$0xf]  ;;  %v4293_v39 = vld [vmem:[#allocation11 + $0xdc] sm:$0xf0] }
  0xbe   : > { %v3420_v6 = vor.u32 %v4212_v55, %v3417_v60  ;;  %v3712_v44 = vor.u32 %v4293_v39, %v3711_v38  ;;  %v3647_v60 = vld [vmem:[#allocation11 + $0x40] sm:$0xf]  ;;  %v3831_v38 = vld [vmem:[#allocation11 + $0x198] sm:$0xf] }
  0xbf   : > { %1329 = vmatpush.bf16.msrb.mxu0 %v3568_v50  ;;  %1342 = vmatpush.bf16.msrb.mxu1 %v3572_v53  ;;  %v4216_v50 = vld [vmem:[#allocation9 + $0x74] sm:$0xf0]  ;;  %v4203_v53 = vld [vmem:[#allocation9 + $0x14] sm:$0xf] }
  0xc0   : > { %1355 = vmatpush.bf16.msrb.mxu2 %v3576_v58  ;;  %v3416_v58 = vor.u32 %v4216_v50, %v3415_v49  ;;  %v3380_v2 = vor.u32 %v4203_v53, %v3377_v54  ;;  %v4285_v49 = vld [vmem:[#allocation11 + $0x9c] sm:$0xf0]  ;;  %v3721_v53 = vld [vmem:[#allocation11 + $0xe8] sm:$0xf0]  ;;  %v4313_v54 = vld [vmem:[#allocation11 + $0x184] sm:$0xf] }
  0xc1   : > { %1368 = vmatpush.bf16.msrb.mxu3 %v3580_v4  ;;  %v3847_v4 = vld [vmem:[#allocation11 + $0x1c8] sm:$0xf]  ;;  %v3680_v55 = vor.u32 %v4285_v49, %v3679_v48  ;;  %v4320_v39 = vld [vmem:[#allocation11 + $0x1b4] sm:$0xf0]  ;;  %v3759_v49 = vld [vmem:[#allocation11 + $0x110] sm:$0xf] }
  0xc3   : > { %1330 = vmatpush.bf16.msrb.mxu0 %v3536_v62  ;;  %1343 = vmatpush.bf16.msrb.mxu1 %v3540_v1  ;;  %v3841_v62 = vld [vmem:[#allocation11 + $0x1e0] sm:$0xf0]  ;;  %v4208_v1 = vld [vmem:[#allocation9 + $0x34] sm:$0xf0] }
  0xc4   : > { %1356 = vmatpush.bf16.msrb.mxu2 %v3544_v7  ;;  %v3807_v7 = vld [vmem:[#allocation11 + $0x180] sm:$0xf]  ;;  %v3844_v9 = vor.u32 %v4321_v61, %v3841_v62 }
  0xc5   : > { %1369 = vmatpush.bf16.msrb.mxu3 %v3548_v16  ;;  %v3808_v16 = vor.u32 %v4317_v8, %v3807_v7  ;;  %v4277_v61 = vld [vmem:[#allocation11 + $0x5c] sm:$0xf0]  ;;  %v4278_v7 = vld [vmem:[#allocation11 + $0x64] sm:$0xf0] }
  0xc6   : > { %v3615_v8 = vld [vmem:[#allocation11] sm:$0xf] }
  0xc7   : > { %1331 = vmatpush.bf16.msrb.mxu0 %v3504_v10  ;;  %1344 = vmatpush.bf16.msrb.mxu1 %v3508_v13  ;;  %v3384_v10 = vor.u32 %v4208_v1, %v3383_v0  ;;  %v3848_v13 = vor.u32 %v4326_v5, %v3847_v4  ;;  %v3777_v0 = vld [vmem:[#allocation11 + $0x160] sm:$0xf0]  ;;  %v3688_v1 = vor.u32 %v4286_v57, %v3687_v56 }
  0xc8   : > { %1357 = vmatpush.bf16.msrb.mxu2 %v3512_v19  ;;  %v3388_v19 = vor.u32 %v4204_v11, %v3385_v12  ;;  %v3648_v5 = vor.u32 %v4277_v61, %v3647_v60  ;;  %v3745_v11 = vld [vmem:[#allocation11 + $0x120] sm:$0xf0]  ;;  %v3855_v12 = vld [vmem:[#allocation11 + $0x1d0] sm:$0xf]  ;;  %v4304_v60 = vld [vmem:[#allocation11 + $0x134] sm:$0xf0] }
  0xc9   : > { %1370 = vmatpush.bf16.msrb.mxu3 %v3516_v28  ;;  %v4310_v28 = vld [vmem:[#allocation11 + $0x164] sm:$0xf0]  ;;  %v4308_v61 = vld [vmem:[#allocation11 + $0x15c] sm:$0xf] }
  0xca   : > { %v3784_v32 = vor.u32 %v4310_v28, %v3783_v27  ;;  %v3823_v27 = vld [vmem:[#allocation11 + $0x190] sm:$0xf] }
  0xcb   : > { %1332 = vmatpush.bf16.msrb.mxu0 %v3472_v22  ;;  %1345 = vmatpush.bf16.msrb.mxu1 %v3476_v25  ;;  %v3852_v22 = vor.u32 %v4322_v14, %v3849_v15  ;;  %v3817_v25 = vld [vmem:[#allocation11 + $0x1a8] sm:$0xf0]  ;;  %v4319_v28 = vld [vmem:[#allocation11 + $0x1ac] sm:$0xf0] }
  0xcc   : > { %1358 = vmatpush.bf16.msrb.mxu2 %v3480_v31  ;;  %v3820_v31 = vor.u32 %v4314_v24, %v3817_v25  ;;  %v3863_v25 = vld [vmem:[#allocation11 + $0x1d8] sm:$0xf] }
  0xcd   : > { %1371 = vmatpush.bf16.msrb.mxu3 %v3484_v40 }
  0xcf   : > { %1333 = vmatpush.bf16.msrb.mxu0 %v3440_v34  ;;  %1346 = vmatpush.bf16.msrb.mxu1 %v3444_v37  ;;  %v3785_v34 = vld [vmem:[#allocation11 + $0x168] sm:$0xf0]  ;;  %v4302_v37 = vld [vmem:[#allocation11 + $0x124] sm:$0xf0] }
  0xd0   : > { %1359 = vmatpush.bf16.msrb.mxu2 %v3448_v43  ;;  %v3788_v40 = vor.u32 %v4306_v33, %v3785_v34  ;;  %v3752_v41 = vor.u32 %v4302_v37, %v3751_v36  ;;  %v3753_v43 = vld [vmem:[#allocation11 + $0x128] sm:$0xf0]  ;;  %v3865_v36 = vld [vmem:[#allocation11 + $0x1f8] sm:$0xf0]  ;;  %v3824_v37 = vor.u32 %v4319_v28, %v3823_v27 }
  0xd1   : > { %1372 = vmatpush.bf16.msrb.mxu3 %v3452_v59  ;;  %v3756_v50 = vor.u32 %v4298_v42, %v3753_v43  ;;  %v3809_v59 = vld [vmem:[#allocation11 + $0x1a0] sm:$0xf0]  ;;  %v3625_v33 = vld [vmem:[#allocation11 + $0x28] sm:$0xf0]  ;;  %v4292_v27 = vld [vmem:[#allocation11 + $0xdc] sm:$0xf] }
  0xd2   : > { %v3737_v28 = vld [vmem:[#allocation11 + $0xf8] sm:$0xf0] }
  0xd3   : > { %1334 = vmatpush.bf16.msrb.mxu0 %v3408_v47  ;;  %1347 = vmatpush.bf16.msrb.mxu1 %v3412_v51  ;;  %v4294_v47 = vld [vmem:[#allocation11 + $0xe4] sm:$0xf0]  ;;  %v4290_v51 = vld [vmem:[#allocation11 + $0xcc] sm:$0xf] }
  0xd4   : > { %1360 = vmatpush.bf16.msrb.mxu2 %v3416_v58  ;;  %v3720_v52 = vor.u32 %v4294_v47, %v3719_v45  ;;  %v3812_v58 = vor.u32 %v4313_v54, %v3809_v59  ;;  %v3724_v62 = vor.u32 %v4290_v51, %v3721_v53  ;;  %v3799_v45 = vld [vmem:[#allocation11 + $0x158] sm:$0xf]  ;;  %v4316_v51 = vld [vmem:[#allocation11 + $0x19c] sm:$0xf]  ;;  %v4281_v53 = vld [vmem:[#allocation11 + $0x84] sm:$0xf] }
  0xd5   : > { %1373 = vmatpush.bf16.msrb.mxu3 %v3420_v6  ;;  %v3655_v6 = vld [vmem:[#allocation11 + $0x48] sm:$0xf]  ;;  %v4312_v47 = vld [vmem:[#allocation11 + $0x174] sm:$0xf0]  ;;  %v3681_v54 = vld [vmem:[#allocation11 + $0xa0] sm:$0xf0] }
  0xd6   : > { %v3800_v56 = vor.u32 %v4312_v47, %v3799_v45  ;;  %v3705_v47 = vld [vmem:[#allocation11 + $0xb8] sm:$0xf0] }
  0xd7   : > { %1335 = vmatpush.bf16.msrb.mxu0 %v3376_v63  ;;  %1348 = vmatpush.bf16.msrb.mxu1 %v3380_v2  ;;  %v4305_v63 = vld [vmem:[#allocation11 + $0x144] sm:$0xf]  ;;  %v4282_v2 = vld [vmem:[#allocation11 + $0x8c] sm:$0xf] }
  0xd8   : > { %1361 = vmatpush.bf16.msrb.mxu2 %v3384_v10  ;;  %v3780_v4 = vor.u32 %v4305_v63, %v3777_v0  ;;  %v4297_v10 = vld [vmem:[#allocation11 + $0x104] sm:$0xf] }
  0xd9   : > { %1374 = vmatpush.bf16.msrb.mxu3 %v3388_v19  ;;  %v3748_v15 = vor.u32 %v4297_v10, %v3745_v11  ;;  %v3657_v19 = vld [vmem:[#allocation11 + $0x68] sm:$0xf0]  ;;  %v4273_v63 = vld [vmem:[#allocation11 + $0x44] sm:$0xf]  ;;  %v4295_v10 = vld [vmem:[#allocation11 + $0xec] sm:$0xf0] }
  0xda   : > { %1336 = vmatmul.bf16.vlgmr.msrb.gmra.mxu0 %v5015_v46  ;;  %1349 = vmatmul.bf16.vlgmr.msrb.gmra.mxu1 %v5015_v46  ;;  %v3660_v29 = vor.u32 %v4274_v18, %v3657_v19  ;;  %v3649_v0 = vld [vmem:[#allocation11 + $0x60] sm:$0xf0]  ;;  %v3695_v11 = vld [vmem:[#allocation11 + $0x90] sm:$0xf] }
  0xdb   : > { %1764 = vmatpush.bf16.msra.mxu0 %v3840_v3  ;;  %1777 = vmatpush.bf16.msra.mxu1 %v3844_v9  ;;  %v3689_v3 = vld [vmem:[#allocation11 + $0xa8] sm:$0xf0]  ;;  %v4269_v9 = vld [vmem:[#allocation11 + $0x1c] sm:$0xf0]  ;;  %v3617_v19 = vld [vmem:[#allocation11 + $0x20] sm:$0xf0] }
  0xdc   : > { %1790 = vmatpush.bf16.msra.mxu2 %v3848_v13  ;;  %1375 = vmatmul.bf16.vlgmr.msrb.gmra.mxu3 %v5015_v46  ;;  %v4327_v13 = vld [vmem:[#allocation11 + $0x1ec] sm:$0xf0]  ;;  %v3692_v14 = vor.u32 %v4282_v2, %v3689_v3  ;;  %v3616_v20 = vor.u32 %v4269_v9, %v3615_v8  ;;  %v3652_v2 = vor.u32 %v4273_v63, %v3649_v0 }
  0xdd   : > { %1362 = vmatmul.bf16.vlgmr.msrb.gmra.mxu2 %v5015_v46  ;;  %1803 = vmatpush.bf16.msra.mxu3 %v3852_v22  ;;  %v4289_v22 = vld [vmem:[#allocation11 + $0xc4] sm:$0xf]  ;;  %v3856_v24 = vor.u32 %v4327_v13, %v3855_v12  ;;  %v3727_v9 = vld [vmem:[#allocation11 + $0xd0] sm:$0xf] }
  0xde   : > { %v3728_v13 = vor.u32 %v4295_v10, %v3727_v9  ;;  %v3697_v9 = vld [vmem:[#allocation11 + $0xb0] sm:$0xf0] }
  0xdf   : > { %1765 = vmatpush.bf16.msra.mxu0 %v3808_v16  ;;  %1778 = vmatpush.bf16.msra.mxu1 %v3812_v58  ;;  %v3656_v16 = vor.u32 %v4278_v7, %v3655_v6  ;;  %v3767_v58 = vld [vmem:[#allocation11 + $0x118] sm:$0xf]  ;;  %v4300_v7 = vld [vmem:[#allocation11 + $0x11c] sm:$0xf] }
  0xe0   : > { %1791 = vmatpush.bf16.msra.mxu2 %v3816_v23  ;;  %v3713_v23 = vld [vmem:[#allocation11 + $0xe0] sm:$0xf0]  ;;  %v3768_v3 = vor.u32 %v4304_v60, %v3767_v58  ;;  %v4296_v6 = vld [vmem:[#allocation11 + $0xf4] sm:$0xf0]  ;;  %v4299_v60 = vld [vmem:[#allocation11 + $0x114] sm:$0xf] }
  0xe1   : > { %1804 = vmatpush.bf16.msra.mxu3 %v3820_v31  ;;  %v3716_v30 = vor.u32 %v4289_v22, %v3713_v23  ;;  %v3624_v31 = vor.u32 %v4270_v21, %v3623_v17  ;;  %v3857_v21 = vld [vmem:[#allocation11 + $0x1f0] sm:$0xf0]  ;;  %v3703_v23 = vld [vmem:[#allocation11 + $0x98] sm:$0xf] }
  0xe3   : > { %1766 = vmatpush.bf16.msra.mxu0 %v3776_v26  ;;  %1779 = vmatpush.bf16.msra.mxu1 %v3780_v4  ;;  %v4328_v26 = vld [vmem:[#allocation11 + $0x1f4] sm:$0xf0] }
  0xe4   : > { %1792 = vmatpush.bf16.msra.mxu2 %v3784_v32  ;;  %v4266_v32 = vld [vmem:[#allocation11 + $0xc] sm:$0xf]  ;;  %v3864_v34 = vor.u32 %v4328_v26, %v3863_v25 }
  0xe5   : > { %1805 = vmatpush.bf16.msra.mxu3 %v3788_v40  ;;  %v3791_v40 = vld [vmem:[#allocation11 + $0x150] sm:$0xf]  ;;  %v3628_v42 = vor.u32 %v4266_v32, %v3625_v33  ;;  %v3740_v32 = vor.u32 %v4292_v27, %v3737_v28 }
  0xe7   : > { %1767 = vmatpush.bf16.msra.mxu0 %v3744_v35  ;;  %1780 = vmatpush.bf16.msra.mxu1 %v3748_v15  ;;  %v4324_v35 = vld [vmem:[#allocation11 + $0x1dc] sm:$0xf] }
  0xe8   : > { %1793 = vmatpush.bf16.msra.mxu2 %v3752_v41  ;;  %v4311_v41 = vld [vmem:[#allocation11 + $0x16c] sm:$0xf0]  ;;  %v3868_v43 = vor.u32 %v4324_v35, %v3865_v36  ;;  %v3769_v15 = vld [vmem:[#allocation11 + $0x138] sm:$0xf0]  ;;  %v4315_v35 = vld [vmem:[#allocation11 + $0x194] sm:$0xf] }
  0xe9   : > { %1806 = vmatpush.bf16.msra.mxu3 %v3756_v50  ;;  %v3792_v48 = vor.u32 %v4311_v41, %v3791_v40  ;;  %v4303_v50 = vld [vmem:[#allocation11 + $0x12c] sm:$0xf0]  ;;  %v3772_v18 = vor.u32 %v4300_v7, %v3769_v15  ;;  %v3825_v36 = vld [vmem:[#allocation11 + $0x1b0] sm:$0xf0] }
  0xea   : > { %v3760_v57 = vor.u32 %v4303_v50, %v3759_v49  ;;  %v3631_v40 = vld [vmem:[#allocation11 + $0x10] sm:$0xf]  ;;  %v3793_v49 = vld [vmem:[#allocation11 + $0x170] sm:$0xf0] }
  0xeb   : > { %1768 = vmatpush.bf16.msra.mxu0 %v3712_v44  ;;  %1781 = vmatpush.bf16.msra.mxu1 %v3716_v30  ;;  %v3832_v44 = vor.u32 %v4320_v39, %v3831_v38  ;;  %v4279_v30 = vld [vmem:[#allocation11 + $0x6c] sm:$0xf0] }
  0xec   : > { %1794 = vmatpush.bf16.msra.mxu2 %v3720_v52  ;;  %v3833_v52 = vld [vmem:[#allocation11 + $0x1b8] sm:$0xf0]  ;;  %v4271_v41 = vld [vmem:[#allocation11 + $0x2c] sm:$0xf0] }
  0xed   : > { %1807 = vmatpush.bf16.msra.mxu3 %v3724_v62  ;;  %v3836_v59 = vor.u32 %v4316_v51, %v3833_v52  ;;  %v3801_v62 = vld [vmem:[#allocation11 + $0x178] sm:$0xf0] }
  0xef   : > { %1769 = vmatpush.bf16.msra.mxu0 %v3680_v55  ;;  %v3684_v55 = vor.u32 %v4281_v53, %v3681_v54  ;;  %v4276_v54 = vld [vmem:[#allocation11 + $0x5c] sm:$0xf] }
  0xf0   : > { %1795 = vmatpush.bf16.msra.mxu2 %v3688_v1  ;;  %v3804_v1 = vor.u32 %v4308_v61, %v3801_v62  ;;  %v3761_v61 = vld [vmem:[#allocation11 + $0x130] sm:$0xf0] }
  0xf1   : > { %1808 = vmatpush.bf16.msra.mxu3 %v3692_v14  ;;  %1782 = vmatpush.bf16.msra.mxu1 %v3684_v55  ;;  %v4287_v14 = vld [vmem:[#allocation11 + $0xac] sm:$0xf0]  ;;  %v3632_v55 = vor.u32 %v4271_v41, %v3631_v40  ;;  %v3764_v0 = vor.u32 %v4299_v60, %v3761_v61 }
  0xf2   : > { %v3696_v22 = vor.u32 %v4287_v14, %v3695_v11  ;;  %v4275_v11 = vld [vmem:[#allocation11 + $0x54] sm:$0xf] }
  0xf3   : > { %1770 = vmatpush.bf16.msra.mxu0 %v3648_v5  ;;  %v3735_v5 = vld [vmem:[#allocation11 + $0xd8] sm:$0xf] }
  0xf4   : > { %1796 = vmatpush.bf16.msra.mxu2 %v3656_v16  ;;  %v4265_v16 = vld [vmem:[#allocation11 + $0x4] sm:$0xf]  ;;  %v3736_v17 = vor.u32 %v4296_v6, %v3735_v5  ;;  %v4291_v5 = vld [vmem:[#allocation11 + $0xd4] sm:$0xf] }
  0xf5   : > { %1809 = vmatpush.bf16.msra.mxu3 %v3660_v29  ;;  %1783 = vmatpush.bf16.msra.mxu1 %v3652_v2  ;;  %v3620_v25 = vor.u32 %v4265_v16, %v3617_v19  ;;  %v3663_v29 = vld [vmem:[#allocation11 + $0x50] sm:$0xf]  ;;  %v3641_v2 = vld [vmem:[#allocation11 + $0x38] sm:$0xf0]  ;;  %v3729_v6 = vld [vmem:[#allocation11 + $0xf0] sm:$0xf0] }
  0xf6   : > { %v3664_v39 = vor.u32 %v4279_v30, %v3663_v29  ;;  %v3732_v7 = vor.u32 %v4291_v5, %v3729_v6 }
  0xf7   : > { %1771 = vmatpush.bf16.msra.mxu0 %v3616_v20  ;;  %v797_v4 = vpop.f32.mrf.mxu0  ;;  %v810_v8 = vpop.f32.mrf.mxu1  ;;  %v4323_v20 = vld [vmem:[#allocation11 + $0x1d4] sm:$0xf] }
  0xf8   : > { %1797 = vmatpush.bf16.msra.mxu2 %v3624_v31  ;;  %v5028_v12 = vpack.c.bf16 %v810_v8, %v797_v4  ;;  %v3860_v26 = vor.u32 %v4323_v20, %v3857_v21  ;;  %v3671_v31 = vld [vmem:[#allocation11 + $0x58] sm:$0xf]  ;;  %v4283_v8 = vld [vmem:[#allocation11 + $0x94] sm:$0xf] }
  0xf9   : > { %1810 = vmatpush.bf16.msra.mxu3 %v3628_v42  ;;  %1784 = vmatpush.bf16.msra.mxu1 %v3620_v25  ;;  %v3828_v42 = vor.u32 %v4315_v35, %v3825_v36  ;;  %v3700_v10 = vor.u32 %v4283_v8, %v3697_v9 }
  0xfa   : > { %1772 = vmatmul.bf16.vlgmr.msra.gmra.mxu0 %v5015_v46 }
  0xfb   : > { %1816 = vmatpush.bf16.msrb.mxu0 %v3856_v24  ;;  %1798 = vmatmul.bf16.vlgmr.msra.gmra.mxu2 %v5015_v46  ;;  %v4288_v24 = vld [vmem:[#allocation11 + $0xb4] sm:$0xf0] }
  0xfc   : > { %1842 = vmatpush.bf16.msrb.mxu2 %v3864_v34  ;;  %1811 = vmatmul.bf16.vlgmr.msra.gmra.mxu3 %v5015_v46  ;;  %v3704_v33 = vor.u32 %v4288_v24, %v3703_v23  ;;  %v4280_v34 = vld [vmem:[#allocation11 + $0x74] sm:$0xf0] }
  0xfd   : > { %1855 = vmatpush.bf16.msrb.mxu3 %v3868_v43  ;;  %1829 = vmatpush.bf16.msrb.mxu1 %v3860_v26  ;;  %v4284_v43 = vld [vmem:[#allocation11 + $0x9c] sm:$0xf]  ;;  %v3672_v52 = vor.u32 %v4280_v34, %v3671_v31 }
  0xfe   : > { %1785 = vmatmul.bf16.vlgmr.msra.gmra.mxu1 %v5015_v46  ;;  %v3708_v51 = vor.u32 %v4284_v43, %v3705_v47 }
  0xff   : > { %1817 = vmatpush.bf16.msrb.mxu0 %v3824_v37  ;;  %v799_v37 = vpop.f32.mrf.mxu0  ;;  %v836_v45 = vpop.f32.mrf.mxu3 }
 0x100   : > { %1843 = vmatpush.bf16.msrb.mxu2 %v3832_v44  ;;  %v823_v38 = vpop.f32.mrf.mxu2  ;;  %v812_v44 = vpop.f32.mrf.mxu1  ;;  %v1929_v37 = vrot.slane %v5028_v12, 4 }
 0x101   : > { %1856 = vmatpush.bf16.msrb.mxu3 %v3836_v59  ;;  %v5031_v50 = vpack.c.bf16 %v836_v45, %v823_v38  ;;  %1830 = vmatpush.bf16.msrb.mxu1 %v3828_v42  ;;  %v3673_v59 = vld [vmem:[#allocation11 + $0x78] sm:$0xf0] }
 0x102   : > { %v3676_v58 = vor.u32 %v4276_v54, %v3673_v59 }
 0x103   : > { %1818 = vmatpush.bf16.msrb.mxu0 %v3792_v48  ;;  %v4307_v48 = vld [vmem:[#allocation11 + $0x154] sm:$0xf]  ;;  %v2029_v40 = vrot.slane %v5031_v50, 4 }
 0x104   : > { %1844 = vmatpush.bf16.msrb.mxu2 %v3800_v56  ;;  %v3796_v53 = vor.u32 %v4307_v48, %v3793_v49  ;;  %v3639_v56 = vld [vmem:[#allocation11 + $0x18] sm:$0xf] }
 0x105   : > { %1857 = vmatpush.bf16.msrb.mxu3 %v3804_v1  ;;  %v4268_v1 = vld [vmem:[#allocation11 + $0x1c] sm:$0xf] }
 0x106   : > { %1831 = vmatpush.bf16.msrb.mxu1 %v3796_v53  ;;  %v3644_v4 = vor.u32 %v4268_v1, %v3641_v2 }
 0x107   : > { %1819 = vmatpush.bf16.msrb.mxu0 %v3760_v57  ;;  %v4272_v57 = vld [vmem:[#allocation11 + $0x34] sm:$0xf0] }
 0x108   : > { %1845 = vmatpush.bf16.msrb.mxu2 %v3768_v3  ;;  %v3640_v62 = vor.u32 %v4272_v57, %v3639_v56  ;;  %v825_v63 = vpop.f32.mrf.mxu2  ;;  %v838_v3 = vpop.f32.mrf.mxu3 }
 0x109   : > { %1858 = vmatpush.bf16.msrb.mxu3 %v3772_v18  ;;  %v3633_v18 = vld [vmem:[#allocation11 + $0x30] sm:$0xf0] }
 0x10a   : > { %1832 = vmatpush.bf16.msrb.mxu1 %v3764_v0 }
 0x10b   : > { %1820 = vmatpush.bf16.msrb.mxu0 %v3728_v13  ;;  %v3665_v13 = vld [vmem:[#allocation11 + $0x70] sm:$0xf0] }
 0x10c   : > { %1846 = vmatpush.bf16.msrb.mxu2 %v3736_v17  ;;  %v3668_v14 = vor.u32 %v4275_v11, %v3665_v13  ;;  %v4267_v17 = vld [vmem:[#allocation11 + $0x14] sm:$0xf] }
 0x10d   : > { %1859 = vmatpush.bf16.msrb.mxu3 %v3740_v32  ;;  %v3636_v20 = vor.u32 %v4267_v17, %v3633_v18 }
 0x10e   : > { %1833 = vmatpush.bf16.msrb.mxu1 %v3732_v7 }
 0x10f   : > { %1821 = vmatpush.bf16.msrb.mxu0 %v3696_v22 }
 0x110   : > { %1847 = vmatpush.bf16.msrb.mxu2 %v3704_v33 }
 0x111   : > { %1860 = vmatpush.bf16.msrb.mxu3 %v3708_v51 }
 0x112   : > { %1834 = vmatpush.bf16.msrb.mxu1 %v3700_v10 }
 0x113   : > { %1822 = vmatpush.bf16.msrb.mxu0 %v3664_v39 }
 0x114   : > { %1848 = vmatpush.bf16.msrb.mxu2 %v3672_v52 }
 0x115   : > { %1861 = vmatpush.bf16.msrb.mxu3 %v3676_v58 }
 0x116   : > { %1835 = vmatpush.bf16.msrb.mxu1 %v3668_v14 }
 0x117   : > { %1823 = vmatpush.bf16.msrb.mxu0 %v3632_v55  ;;  %v849_v15 = vpop.f32.mrf.mxu0  ;;  %v862_v16 = vpop.f32.mrf.mxu1 }
 0x118   : > { %1849 = vmatpush.bf16.msrb.mxu2 %v3640_v62  ;;  %v1870_v19 = vpack.c.bf16 %v862_v16, %v849_v15 }
 0x119   : > { %1862 = vmatpush.bf16.msrb.mxu3 %v3644_v4 }
 0x11a   : > { %1824 = vmatmul.bf16.vlgmr.msrb.gmra.mxu0 %v5015_v46  ;;  %1836 = vmatpush.bf16.msrb.mxu1 %v3636_v20  ;;  %v2129_v51 = vrot.slane %v1870_v19, 4 }
 0x11b   : > { %1850 = vmatmul.bf16.vlgmr.msrb.gmra.mxu2 %v5015_v46 }
 0x11c   : > { %1863 = vmatmul.bf16.vlgmr.msrb.gmra.mxu3 %v5015_v46 }
 0x11d   : > { %1837 = vmatmul.bf16.vlgmr.msrb.gmra.mxu1 %v5015_v46 }
 0x11f   : > { %v851_v21 = vpop.f32.mrf.mxu0  ;;  %v864_v23 = vpop.f32.mrf.mxu1 }
 0x120   : > { %v875_v22 = vpop.f32.mrf.mxu2  ;;  %v888_v24 = vpop.f32.mrf.mxu3 }
 0x121   : > { %v1871_v25 = vpack.c.bf16 %v888_v24, %v875_v22 }
 0x123   : > { %v2229_v59 = vrot.slane %v1871_v25, 4 }
 0x128   : > { %v877_v26 = vpop.f32.mrf.mxu2  ;;  %v890_v27 = vpop.f32.mrf.mxu3 }
 0x137   : > { %v1285_v28 = vpop.f32.mrf.mxu0  ;;  %v1298_v29 = vpop.f32.mrf.mxu1 }
 0x138   : > { %v1872_v30 = vpack.c.bf16 %v1298_v29, %v1285_v28 }
 0x13a   : > { %v1932_v31 = vrot.slane %v1872_v30, 4  ;;  %1887 = vmatpush.bf16.xpose.msra.mxu0 %v1872_v30 }
 0x13c   : > { %1941 = vmatpush.bf16.xpose.msra.mxu2 %v1932_v31 }
 0x13f   : > { %v1287_v32 = vpop.f32.mrf.mxu0  ;;  %v1300_v34 = vpop.f32.mrf.mxu1 }
 0x140   : > { %v1311_v33 = vpop.f32.mrf.mxu2  ;;  %v1324_v35 = vpop.f32.mrf.mxu3 }
 0x141   : > { %v1873_v36 = vpack.c.bf16 %v1324_v35, %v1311_v33  ;;  %1888 = vmatmul.bf16.vlgmr.msra.gmra.mxu0 %v5028_v12 }
 0x143   : > { %v2032_v38 = vrot.slane %v1873_v36, 4  ;;  %1989 = vmatpush.bf16.xpose.msrb.mxu0 %v1873_v36  ;;  %1942 = vmatmul.bf16.vlgmr.msra.gmra.mxu2 %v1929_v37 }
 0x145   : > { %2041 = vmatpush.bf16.xpose.msrb.mxu2 %v2032_v38 }
 0x148   : > { %v1313_v46 = vpop.f32.mrf.mxu2  ;;  %v1326_v39 = vpop.f32.mrf.mxu3 }
 0x151   : > { %1990 = vmatmul.bf16.vlgmr.msrb.gmra.mxu0 %v5031_v50 }
 0x153   : > { %2042 = vmatmul.bf16.vlgmr.msrb.gmra.mxu2 %v2029_v40 }
 0x157   : > { %v1337_v41 = vpop.f32.mrf.mxu0  ;;  %v1350_v42 = vpop.f32.mrf.mxu1 }
 0x158   : > { %v1874_v43 = vpack.c.bf16 %v1350_v42, %v1337_v41 }
 0x15a   : > { %v2132_v44 = vrot.slane %v1874_v43, 4  ;;  %2089 = vmatpush.bf16.xpose.msra.mxu0 %v1874_v43 }
 0x15c   : > { %2141 = vmatpush.bf16.xpose.msra.mxu2 %v2132_v44 }
 0x15f   : > { %v1339_v45 = vpop.f32.mrf.mxu0  ;;  %v1352_v47 = vpop.f32.mrf.mxu1 }
 0x160   : > { %v1363_v12 = vpop.f32.mrf.mxu2  ;;  %v1376_v48 = vpop.f32.mrf.mxu3 }
 0x161   : > { %v1875_v49 = vpack.c.bf16 %v1376_v48, %v1363_v12  ;;  %2090 = vmatmul.bf16.vlgmr.msra.gmra.mxu0 %v1870_v19 }
 0x163   : > { %v2232_v52 = vrot.slane %v1875_v49, 4  ;;  %2189 = vmatpush.bf16.xpose.msrb.mxu0 %v1875_v49  ;;  %2142 = vmatmul.bf16.vlgmr.msra.gmra.mxu2 %v2129_v51 }
 0x165   : > { %2241 = vmatpush.bf16.xpose.msrb.mxu2 %v2232_v52 }
 0x168   : > { %v1365_v53 = vpop.f32.mrf.mxu2  ;;  %v1378_v50 = vpop.f32.mrf.mxu3 }
 0x171   : > { %2190 = vmatmul.bf16.vlgmr.msrb.gmra.mxu0 %v1871_v25 }
 0x173   : > { %2242 = vmatmul.bf16.vlgmr.msrb.gmra.mxu2 %v2229_v59 }
 0x177   : > { %v1773_v54 = vpop.f32.mrf.mxu0 }
 0x17b   : > { %v1786_v61 = vpop.f32.mrf.mxu1 }
 0x17c   : > { %v1876_v63 = vpack.c.bf16 %v1786_v61, %v1773_v54 }
 0x17e   : > { %v1799_v56 = vpop.f32.mrf.mxu2  ;;  %v1909_v2 = vsel %vm1907_vm0, %v1876_v63, 0  ;;  %v1958_v3 = vrot.slane %v1876_v63, 4 }
 0x17f   : > { %v1775_v55 = vpop.f32.mrf.mxu0  ;;  %v1812_v57 = vpop.f32.mrf.mxu3  ;;  %1918 = vmatpush.bf16.msra.mxu1 %v1909_v2 }
 0x180   : > { %v1877_v58 = vpack.c.bf16 %v1812_v57, %v1799_v56  ;;  %v1963_v5 = vsel %vm1907_vm0, %v1958_v3, 0 }
 0x181   : > { %1972 = vmatpush.bf16.msra.mxu3 %v1963_v5 }
 0x182   : > { %v2058_v62 = vrot.slane %v1877_v58, 4  ;;  %v2009_v0 = vsel %vm1907_vm0, %v1877_v58, 0 }
 0x183   : > { %2018 = vmatpush.bf16.msrb.mxu1 %v2009_v0  ;;  %v1788_v6 = vpop.f32.mrf.mxu1 }
 0x184   : > { %v2063_v4 = vsel %vm1907_vm0, %v2058_v62, 0 }
 0x185   : > { %2072 = vmatpush.bf16.msrb.mxu3 %v2063_v4 }
 0x186   : > { %v1801_v60 = vpop.f32.mrf.mxu2 }
 0x187   : > { %v1814_v1 = vpop.f32.mrf.mxu3 }
 0x197   : > { %v1825_v7 = vpop.f32.mrf.mxu0 }
 0x19a   : > { %v1838_v17 = vpop.f32.mrf.mxu1 }
 0x19b   : > { %v1878_v19 = vpack.c.bf16 %v1838_v17, %v1825_v7 }
 0x19d   : > { %v2109_v20 = vsel %vm1907_vm0, %v1878_v19, 0  ;;  %v2158_v21 = vrot.slane %v1878_v19, 4 }
 0x19e   : > { %v1851_v9 = vpop.f32.mrf.mxu2 }
 0x19f   : > { %v1827_v8 = vpop.f32.mrf.mxu0  ;;  %v1864_v10 = vpop.f32.mrf.mxu3  ;;  %v2163_v22 = vsel %vm1907_vm0, %v2158_v21, 0 }
 0x1a0   : > { %v1879_v11 = vpack.c.bf16 %v1864_v10, %v1851_v9 }
 0x1a2   : > { %v5046_v13 = vsel %vm1907_vm0, %v1879_v11, 0  ;;  %v2258_v14 = vrot.slane %v1879_v11, 4  ;;  %v1840_v23 = vpop.f32.mrf.mxu1 }
 0x1a4   : > { %v5049_v16 = vsel %vm1907_vm0, %v2258_v14, 0 }
 0x1a6   : > { %v1853_v15 = vpop.f32.mrf.mxu2 }
 0x1a7   : > { %v1866_v18 = vpop.f32.mrf.mxu3 }
 0x1be   : > { %v1889_v24 = vpop.f32.mrf.mxu0 }
 0x1bf   : > { %v1894_v30 = vsel %vm1893_vm1, %v1889_v24, -inf }
 0x1c6   : > { %v1891_v25 = vpop.f32.mrf.mxu0  ;;  %v1943_v26 = vpop.f32.mrf.mxu2 }
 0x1c7   : > { %v1947_v27 = vsel %vm1893_vm1, %v1943_v26, -inf }
 0x1c8   : > { %1948 = vmax.xlane.f32.xlu0 %v1947_v27 }
 0x1ce   : > { %v1945_v28 = vpop.f32.mrf.mxu2  ;;  %v1991_v29 = vpop.f32.mrf.mxu0 }
 0x1cf   : > { %v1995_v36 = vsel %vm1893_vm1, %v1991_v29, -inf }
 0x1d0   : > { %1895 = vmax.xlane.f32.xlu0 %v1894_v30 }
 0x1d6   : > { %v1993_v31 = vpop.f32.mrf.mxu0  ;;  %v2043_v32 = vpop.f32.mrf.mxu2 }
 0x1d7   : > { %v2047_v33 = vsel %vm1893_vm1, %v2043_v32, -inf }
 0x1d8   : > { %2048 = vmax.xlane.f32.xlu1 %v2047_v33  ;;  %v4344_v33 = vld [vmem:[#allocation12 + $0x78] sm:$0xff] }
 0x1de   : > { %v2045_v34 = vpop.f32.mrf.mxu2  ;;  %v5056_v35 = vpop.f32.mrf.mxu0 }
 0x1df   : > { %v2095_v41 = vsel %vm1893_vm1, %v5056_v35, -inf  ;;  %v4335_v34 = vld [vmem:[#allocation12 + $0x30] sm:$0xff] }
 0x1e0   : > { %1996 = vmax.xlane.f32.xlu1 %v1995_v36  ;;  %v4334_v36 = vld [vmem:[#allocation12 + $0x28] sm:$0xff] }
 0x1e6   : > { %v2093_v37 = vpop.f32.mrf.mxu0  ;;  %v2143_v38 = vpop.f32.mrf.mxu2 }
 0x1e7   : > { %v2147_v46 = vsel %vm1893_vm1, %v2143_v38, -inf  ;;  %v4342_v37 = vld [vmem:[#allocation12 + $0x68] sm:$0xff] }
 0x1e8   : > { %2148 = vmax.xlane.f32.xlu2 %v2147_v46  ;;  %v4360_v46 = vld [vmem:[#allocation12 + $0xf8] sm:$0xff] }
 0x1ee   : > { %v2145_v39 = vpop.f32.mrf.mxu2  ;;  %v2191_v40 = vpop.f32.mrf.mxu0 }
 0x1ef   : > { %v2195_v42 = vsel %vm1893_vm1, %v2191_v40, -inf  ;;  %v4333_v39 = vld [vmem:[#allocation12 + $0x20] sm:$0xff] }
 0x1f0   : > { %2096 = vmax.xlane.f32.xlu2 %v2095_v41  ;;  %2196 = vmax.xlane.f32.xlu1 %v2195_v42  ;;  %v4351_v41 = vld [vmem:[#allocation12 + $0xb0] sm:$0xff] }
 0x1f1   : > { %v4359_v42 = vld [vmem:[#allocation12 + $0xf0] sm:$0xff] }
 0x1f6   : > { %v2193_v43 = vpop.f32.mrf.mxu0  ;;  %v2243_v44 = vpop.f32.mrf.mxu2 }
 0x1f7   : > { %v2247_v45 = vsel %vm1893_vm1, %v2243_v44, -inf  ;;  %v4332_v43 = vld [vmem:[#allocation12 + $0x18] sm:$0xff] }
 0x1f8   : > { %2248 = vmax.xlane.f32.xlu0 %v2247_v45  ;;  %v4350_v45 = vld [vmem:[#allocation12 + $0xa8] sm:$0xff] }
 0x1fe   : > { %v2245_v47 = vpop.f32.mrf.mxu2 }
 0x1ff   : > { %v4358_v47 = vld [vmem:[#allocation12 + $0xe8] sm:$0xff] }
 0x23b   : > { %v1949_v12 = vpop.xlane.xlu0 %1948 }
 0x23c   : > { %v1950_v48 = vsub.f32 %v1943_v26, %v1949_v12  ;;  %v4331_v12 = vld [vmem:[#allocation12 + $0x10] sm:$0xff] }
 0x23e   : > { %v1951_v49 = vmul.f32 1.442695, %v1950_v48  ;;  %v4339_v48 = vld [vmem:[#allocation12 + $0x50] sm:$0xff] }
 0x240   : > { %4490 = vpow2.f32 %v1951_v49  ;;  %v4349_v49 = vld [vmem:[#allocation12 + $0xa0] sm:$0xff] }
 0x243   : > { %v1896_v51 = vpop.xlane.xlu0 %1895 }
 0x244   : > { %v1897_v52 = vsub.f32 %v1889_v24, %v1896_v51  ;;  %v4357_v51 = vld [vmem:[#allocation12 + $0xe0] sm:$0xff] }
 0x246   : > { %v4491_v53 = vpop.eup %4490  ;;  %v1898_v50 = vmul.f32 1.442695, %v1897_v52  ;;  %v4330_v52 = vld [vmem:[#allocation12 + $0x8] sm:$0xff] }
 0x247   : > { %v1956_v54 = vpack.c.bf16 %v4491_v53, %v4491_v53  ;;  %v1953_v19 = vsel %vm1893_vm1, %v4491_v53, 0.0  ;;  %v4338_v53 = vld [vmem:[#allocation12 + $0x48] sm:$0xff] }
 0x248   : > { %4492 = vpow2.f32 %v1898_v50  ;;  %v4348_v50 = vld [vmem:[#allocation12 + $0x98] sm:$0xff] }
 0x249   : > { %3870 = vmatmul.msk.bf16.vlgmr.msra.gmra.mxu3 %vm1893_vm1, %v1956_v54  ;;  %v4356_v54 = vld [vmem:[#allocation12 + $0xd8] sm:$0xff] }
 0x24a   : > { %2172 = vmatpush.bf16.msra.mxu3 %v2163_v22 }
 0x24b   : > { %v2049_v59 = vpop.xlane.xlu1 %2048 }
 0x24c   : > { %v2050_v55 = vsub.f32 %v2043_v32, %v2049_v59  ;;  %v4336_v32 = vld [vmem:[#allocation12 + $0x38] sm:$0xff]  ;;  %v4329_v59 = vld [vmem:[#allocation12] sm:$0xff] }
 0x24d   : > { %2830 = vmatpush.bf16.msra.mxu0 %v4336_v32 }
 0x24e   : > { %v4493_v56 = vpop.eup %4492  ;;  %v2051_v57 = vmul.f32 1.442695, %v2050_v55  ;;  %v4337_v55 = vld [vmem:[#allocation12 + $0x40] sm:$0xff] }
 0x24f   : > { %v1903_v58 = vpack.c.bf16 %v4493_v56, %v4493_v56  ;;  %v1900_v60 = vsel %vm1893_vm1, %v4493_v56, 0.0  ;;  %v4347_v56 = vld [vmem:[#allocation12 + $0x90] sm:$0xff] }
 0x250   : > { %4494 = vpow2.f32 %v2051_v57  ;;  %1901 = vadd.xlane.f32.xlu1 %v1900_v60  ;;  %v4355_v57 = vld [vmem:[#allocation12 + $0xd0] sm:$0xff]  ;;  %v4376_v60 = vld [vmem:[#allocation12 + $0x178] sm:$0xff] }
 0x251   : > { %3869 = vmatmul.msk.bf16.vlgmr.msra.gmra.mxu1 %vm1893_vm1, %v1903_v58  ;;  %2831 = vmatpush.bf16.msra.mxu0 %v4335_v34  ;;  %v4368_v58 = vld [vmem:[#allocation12 + $0x138] sm:$0xff]  ;;  %v4389_v34 = vld [vmem:[#allocation12 + $0x1e0] sm:$0xff] }
 0x252   : > { %2118 = vmatpush.bf16.msra.mxu1 %v2109_v20 }
 0x253   : > { %v1997_v61 = vpop.xlane.xlu1 %1996 }
 0x254   : > { %v1998_v62 = vsub.f32 %v1991_v29, %v1997_v61 }
 0x255   : > { %2832 = vmatpush.bf16.msra.mxu0 %v4334_v36 }
 0x256   : > { %v4495_v63 = vpop.eup %4494  ;;  %v1999_v0 = vmul.f32 1.442695, %v1998_v62  ;;  %v4346_v62 = vld [vmem:[#allocation12 + $0x88] sm:$0xff] }
 0x257   : > { %v2056_v1 = vpack.c.bf16 %v4495_v63, %v4495_v63  ;;  %v2053_v2 = vsel %vm1893_vm1, %v4495_v63, 0.0  ;;  %v4354_v63 = vld [vmem:[#allocation12 + $0xc8] sm:$0xff] }
 0x258   : > { %4496 = vpow2.f32 %v1999_v0  ;;  %2054 = vadd.xlane.f32.xlu0 %v2053_v2  ;;  %v4367_v0 = vld [vmem:[#allocation12 + $0x130] sm:$0xff]  ;;  %v4345_v2 = vld [vmem:[#allocation12 + $0x80] sm:$0xff] }
 0x259   : > { %3872 = vmatmul.msk.bf16.vlgmr.msrb.gmra.mxu3 %vm1893_vm1, %v2056_v1  ;;  %2833 = vmatpush.bf16.msra.mxu0 %v4333_v39  ;;  %v4375_v1 = vld [vmem:[#allocation12 + $0x170] sm:$0xff]  ;;  %v4361_v39 = vld [vmem:[#allocation12 + $0x100] sm:$0xff] }
 0x25a   : > { %2272 = vmatpush.bf16.msrb.mxu3 %v5049_v16 }
 0x25b   : > { %v2149_v3 = vpop.xlane.xlu2 %2148 }
 0x25c   : > { %v2150_v4 = vsub.f32 %v2143_v38, %v2149_v3  ;;  %v4352_v38 = vld [vmem:[#allocation12 + $0xb8] sm:$0xff]  ;;  %v4353_v3 = vld [vmem:[#allocation12 + $0xc0] sm:$0xff] }
 0x25d   : > { %2856 = vmatpush.bf16.msra.mxu2 %v4352_v38  ;;  %2834 = vmatpush.bf16.msra.mxu0 %v4332_v43 }
 0x25e   : > { %v4497_v5 = vpop.eup %4496  ;;  %v2151_v6 = vmul.f32 1.442695, %v2150_v4  ;;  %v4366_v4 = vld [vmem:[#allocation12 + $0x128] sm:$0xff] }
 0x25f   : > { %v2004_v7 = vpack.c.bf16 %v4497_v5, %v4497_v5  ;;  %v2001_v8 = vsel %vm1893_vm1, %v4497_v5, 0.0 }
 0x260   : > { %4498 = vpow2.f32 %v2151_v6  ;;  %2002 = vadd.xlane.f32.xlu2 %v2001_v8  ;;  %v4374_v6 = vld [vmem:[#allocation12 + $0x168] sm:$0xff] }
 0x261   : > { %3871 = vmatmul.msk.bf16.vlgmr.msrb.gmra.mxu1 %vm1893_vm1, %v2004_v7  ;;  %2857 = vmatpush.bf16.msra.mxu2 %v4351_v41  ;;  %v4380_v41 = vld [vmem:[#allocation12 + $0x198] sm:$0xff] }
 0x262   : > { %2218 = vmatpush.bf16.msrb.mxu1 %v5046_v13  ;;  %2835 = vmatpush.bf16.msra.mxu0 %v4331_v12  ;;  %v4387_v12 = vld [vmem:[#allocation12 + $0x1d0] sm:$0xff] }
 0x263   : > { %v2097_v9 = vpop.xlane.xlu2 %2096  ;;  %v2197_v10 = vpop.xlane.xlu1 %2196 }
 0x264   : > { %v2098_v11 = vsub.f32 %v5056_v35, %v2097_v9  ;;  %v2198_v14 = vsub.f32 %v2191_v40, %v2197_v10  ;;  %v4343_v35 = vld [vmem:[#allocation12 + $0x70] sm:$0xff]  ;;  %v4341_v40 = vld [vmem:[#allocation12 + $0x60] sm:$0xff] }
 0x265   : > { %2858 = vmatpush.bf16.msra.mxu2 %v4350_v45  ;;  %v4365_v10 = vld [vmem:[#allocation12 + $0x120] sm:$0xff] }
 0x266   : > { %v4499_v15 = vpop.eup %4498  ;;  %v2099_v16 = vmul.f32 1.442695, %v2098_v11  ;;  %v2199_v17 = vmul.f32 1.442695, %v2198_v14  ;;  %2836 = vmatpush.bf16.msra.mxu0 %v4330_v52  ;;  %v4373_v11 = vld [vmem:[#allocation12 + $0x160] sm:$0xff]  ;;  %v4384_v14 = vld [vmem:[#allocation12 + $0x1b8] sm:$0xff] }
 0x267   : > { %v2156_v18 = vpack.c.bf16 %v4499_v15, %v4499_v15  ;;  %v2153_v30 = vsel %vm1893_vm1, %v4499_v15, 0.0  ;;  %v4392_v15 = vld [vmem:[#allocation12 + $0x1f8] sm:$0xff] }
 0x268   : > { %4500 = vpow2.f32 %v2099_v16  ;;  %1954 = vadd.xlane.f32.xlu2 %v1953_v19  ;;  %v4364_v19 = vld [vmem:[#allocation12 + $0x118] sm:$0xff] }
 0x269   : > { %4502 = vpow2.f32 %v2199_v17  ;;  %3874 = vmatmul.msk.bf16.vlgmr.msra.gmra.mxu3 %vm1893_vm1, %v2156_v18  ;;  %2859 = vmatpush.bf16.msra.mxu2 %v4349_v49 }
 0x26a   : > { %2869 = vmatpush.bf16.msra.mxu3 %v4360_v46  ;;  %2837 = vmatpush.bf16.msra.mxu0 %v4329_v59  ;;  %v4377_v59 = vld [vmem:[#allocation12 + $0x180] sm:$0xff] }
 0x26b   : > { %v2249_v20 = vpop.xlane.xlu0 %2248 }
 0x26c   : > { %v2250_v21 = vsub.f32 %v2243_v44, %v2249_v20  ;;  %v4340_v44 = vld [vmem:[#allocation12 + $0x58] sm:$0xff] }
 0x26d   : > { %2860 = vmatpush.bf16.msra.mxu2 %v4348_v50  ;;  %v4372_v20 = vld [vmem:[#allocation12 + $0x158] sm:$0xff]  ;;  %v4378_v50 = vld [vmem:[#allocation12 + $0x188] sm:$0xff] }
 0x26e   : > { %v4501_v22 = vpop.eup %4500  ;;  %v2251_v13 = vmul.f32 1.442695, %v2250_v21  ;;  %2870 = vmatpush.bf16.msra.mxu3 %v4359_v42  ;;  %2882 = vmatpush.bf16.msrb.mxu0 %v4368_v58  ;;  %v4383_v21 = vld [vmem:[#allocation12 + $0x1b0] sm:$0xff]  ;;  %v4388_v42 = vld [vmem:[#allocation12 + $0x1d8] sm:$0xff] }
 0x26f   : > { %v4503_v23 = vpop.eup %4502  ;;  %v2104_v24 = vpack.c.bf16 %v4501_v22, %v4501_v22  ;;  %v2101_v25 = vsel %vm1893_vm1, %v4501_v22, 0.0 }
 0x270   : > { %4504 = vpow2.f32 %v2251_v13  ;;  %2102 = vadd.xlane.f32.xlu2 %v2101_v25  ;;  %v2201_v26 = vsel %vm1893_vm1, %v4503_v23, 0.0  ;;  %v2204_v31 = vpack.c.bf16 %v4503_v23, %v4503_v23  ;;  %v4391_v13 = vld [vmem:[#allocation12 + $0x1f0] sm:$0xff] }
 0x271   : > { %2202 = vadd.xlane.f32.xlu0 %v2201_v26  ;;  %3873 = vmatmul.msk.bf16.vlgmr.msra.gmra.mxu1 %vm1893_vm1, %v2104_v24  ;;  %v4363_v24 = vld [vmem:[#allocation12 + $0x110] sm:$0xff]  ;;  %v4382_v26 = vld [vmem:[#allocation12 + $0x1a8] sm:$0xff] }
 0x272   : > { %2843 = vmatpush.bf16.msra.mxu1 %v4344_v33  ;;  %2871 = vmatpush.bf16.msra.mxu3 %v4358_v47  ;;  %v4371_v25 = vld [vmem:[#allocation12 + $0x150] sm:$0xff] }
 0x273   : > { %2861 = vmatpush.bf16.msra.mxu2 %v4347_v56  ;;  %2883 = vmatpush.bf16.msrb.mxu0 %v4367_v0  ;;  %v4379_v47 = vld [vmem:[#allocation12 + $0x190] sm:$0xff] }
 0x276   : > { %v4505_v27 = vpop.eup %4504  ;;  %2844 = vmatpush.bf16.msra.mxu1 %v4343_v35  ;;  %2872 = vmatpush.bf16.msra.mxu3 %v4357_v51 }
 0x277   : > { %v2256_v28 = vpack.c.bf16 %v4505_v27, %v4505_v27  ;;  %v2253_v29 = vsel %vm1893_vm1, %v4505_v27, 0.0  ;;  %2862 = vmatpush.bf16.msra.mxu2 %v4346_v62  ;;  %2884 = vmatpush.bf16.msrb.mxu0 %v4366_v4  ;;  %v4390_v27 = vld [vmem:[#allocation12 + $0x1e8] sm:$0xff] }
 0x278   : > { %2254 = vadd.xlane.f32.xlu1 %v2253_v29  ;;  %v4362_v29 = vld [vmem:[#allocation12 + $0x108] sm:$0xff] }
 0x279   : > { %2154 = vadd.xlane.f32.xlu0 %v2153_v30  ;;  %3876 = vmatmul.msk.bf16.vlgmr.msrb.gmra.mxu3 %vm1893_vm1, %v2256_v28  ;;  %v4370_v30 = vld [vmem:[#allocation12 + $0x148] sm:$0xff] }
 0x27a   : > { %2845 = vmatpush.bf16.msra.mxu1 %v4342_v37  ;;  %2873 = vmatpush.bf16.msra.mxu3 %v4356_v54  ;;  %v4386_v54 = vld [vmem:[#allocation12 + $0x1c8] sm:$0xff] }
 0x27b   : > { %2863 = vmatpush.bf16.msra.mxu2 %v4345_v2  ;;  %2885 = vmatpush.bf16.msrb.mxu0 %v4365_v10 }
 0x27e   : > { %2846 = vmatpush.bf16.msra.mxu1 %v4341_v40  ;;  %2874 = vmatpush.bf16.msra.mxu3 %v4355_v57  ;;  %v4369_v40 = vld [vmem:[#allocation12 + $0x140] sm:$0xff] }
 0x27f   : > { %2908 = vmatpush.bf16.msrb.mxu2 %v4384_v14  ;;  %2886 = vmatpush.bf16.msrb.mxu0 %v4364_v19 }
 0x281   : > { %3875 = vmatmul.msk.bf16.vlgmr.msrb.gmra.mxu1 %vm1893_vm1, %v2204_v31  ;;  %v4381_v31 = vld [vmem:[#allocation12 + $0x1a0] sm:$0xff] }
 0x282   : > { %2847 = vmatpush.bf16.msra.mxu1 %v4340_v44  ;;  %2875 = vmatpush.bf16.msra.mxu3 %v4354_v63 }
 0x283   : > { %2909 = vmatpush.bf16.msrb.mxu2 %v4383_v21  ;;  %2887 = vmatpush.bf16.msrb.mxu0 %v4363_v24 }
 0x286   : > { %2848 = vmatpush.bf16.msra.mxu1 %v4339_v48  ;;  %2876 = vmatpush.bf16.msra.mxu3 %v4353_v3 }
 0x287   : > { %2910 = vmatpush.bf16.msrb.mxu2 %v4382_v26  ;;  %2888 = vmatpush.bf16.msrb.mxu0 %v4362_v29 }
 0x28a   : > { %2849 = vmatpush.bf16.msra.mxu1 %v4338_v53  ;;  %2921 = vmatpush.bf16.msrb.mxu3 %v4392_v15 }
 0x28b   : > { %2911 = vmatpush.bf16.msrb.mxu2 %v4381_v31  ;;  %2889 = vmatpush.bf16.msrb.mxu0 %v4361_v39 }
 0x28e   : > { %2850 = vmatpush.bf16.msra.mxu1 %v4337_v55  ;;  %2922 = vmatpush.bf16.msrb.mxu3 %v4391_v13 }
 0x28f   : > { %2912 = vmatpush.bf16.msrb.mxu2 %v4380_v41 }
 0x292   : > { %2895 = vmatpush.bf16.msrb.mxu1 %v4376_v60  ;;  %2923 = vmatpush.bf16.msrb.mxu3 %v4390_v27 }
 0x293   : > { %2913 = vmatpush.bf16.msrb.mxu2 %v4379_v47 }
 0x296   : > { %2896 = vmatpush.bf16.msrb.mxu1 %v4375_v1  ;;  %2924 = vmatpush.bf16.msrb.mxu3 %v4389_v34 }
 0x297   : > { %2914 = vmatpush.bf16.msrb.mxu2 %v4378_v50 }
 0x29a   : > { %2897 = vmatpush.bf16.msrb.mxu1 %v4374_v6  ;;  %2925 = vmatpush.bf16.msrb.mxu3 %v4388_v42 }
 0x29b   : > { %2915 = vmatpush.bf16.msrb.mxu2 %v4377_v59 }
 0x29e   : > { %2898 = vmatpush.bf16.msrb.mxu1 %v4373_v11  ;;  %2926 = vmatpush.bf16.msrb.mxu3 %v4387_v12 }
 0x2a2   : > { %2899 = vmatpush.bf16.msrb.mxu1 %v4372_v20  ;;  %2927 = vmatpush.bf16.msrb.mxu3 %v4386_v54 }
 0x2a6   : > { %2900 = vmatpush.bf16.msrb.mxu1 %v4371_v25 }
 0x2aa   : > { %2901 = vmatpush.bf16.msrb.mxu1 %v4370_v30 }
 0x2ae   : > { %2902 = vmatpush.bf16.msrb.mxu1 %v4369_v40 }
 0x2c3   : > { %v1902_v61 = vpop.xlane.xlu1 %1901 }
 0x2c4   : > { %4506 = vrcp.f32 %v1902_v61  ;;  %v4385_v61 = vld [vmem:[#allocation12 + $0x1c0] sm:$0xff] }
 0x2c5   : > { %2928 = vmatpush.bf16.msrb.mxu3 %v4385_v61 }
 0x2ca   : > { %v4507_v7 = vpop.eup %4506 }
 0x2cb   : > { %v2055_v17 = vpop.xlane.xlu0 %2054 }
 0x2cc   : > { %v5083_v5 = vpop.f32.mrf.mxu3  ;;  %4508 = vrcp.f32 %v2055_v17 }
 0x2ce   : > { %v1920_v8 = vpop.f32.mrf.mxu1 }
 0x2cf   : > { %v1925_v9 = vmul.f32 %v4507_v7, %v1920_v8 }
 0x2d1   : > { %v1926_v16 = vpack.c.bf16 %v1925_v9, %v1925_v9 }
 0x2d2   : > { %v4509_v32 = vpop.eup %4508 }
 0x2d3   : > { %1927 = vst [vmem:[#allocation2] sm:$0xf] %v1926_v16  ;;  %v2003_v18 = vpop.xlane.xlu2 %2002 }
 0x2d4   : > { %v1976_v22 = vpop.f32.mrf.mxu3  ;;  %4510 = vrcp.f32 %v2003_v18 }
 0x2d6   : > { %v1922_v23 = vpop.f32.mrf.mxu1 }
 0x2da   : > { %v4511_v36 = vpop.eup %4510 }
 0x2db   : > { %v1955_v28 = vpop.xlane.xlu2 %1954 }
 0x2dc   : > { %4512 = vrcp.f32 %v1955_v28  ;;  %v2074_v33 = vpop.f32.mrf.mxu3 }
 0x2dd   : > { %v2079_v35 = vmul.f32 %v4509_v32, %v2074_v33 }
 0x2de   : > { %v2020_v37 = vpop.f32.mrf.mxu1 }
 0x2df   : > { %v2080_v38 = vpack.c.bf16 %v2079_v35, %v2079_v35  ;;  %v2025_v46 = vmul.f32 %v4511_v36, %v2020_v37 }
 0x2e1   : > { %2081 = vst [vmem:[#allocation2 + $0xc] sm:$0xf] %v2080_v38  ;;  %v2026_v43 = vpack.c.bf16 %v2025_v46, %v2025_v46 }
 0x2e2   : > { %v4513_v44 = vpop.eup %4512 }
 0x2e3   : > { %v1979_v45 = vmul.f32 %v4513_v44, %v5083_v5  ;;  %2027 = vst [vmem:[#allocation2 + $0x8] sm:$0xf] %v2026_v43  ;;  %v2103_v52 = vpop.xlane.xlu2 %2102  ;;  %v4489_v43 = vld [vmem:[%s5129_s6] ss:$0 sm:$0xff] }
 0x2e4   : > { %v2203_v48 = vpop.xlane.xlu0 %2202  ;;  %v2076_v49 = vpop.f32.mrf.mxu3  ;;  %4514 = vrcp.f32 %v2103_v52 }
 0x2e5   : > { %v1980_v51 = vpack.c.bf16 %v1979_v45, %v1979_v45 }
 0x2e6   : > { %v2022_v53 = vpop.f32.mrf.mxu1 }
 0x2e7   : > { %1981 = vst [vmem:[#allocation2 + $0x4] sm:$0xf] %v1980_v51 }
 0x2ea   : > { %v2283_v55 = vld [vmem:[#allocation2 + $0x8] sm:$0xff]  ;;  %v4515_v0 = vpop.eup %4514 }
 0x2eb   : > { %v2424_v56 = vunpack.c.l.b16 %v2283_v55  ;;  %v2425_v57 = vunpack.c.h.b16 %v2283_v55  ;;  %v2255_v10 = vpop.xlane.xlu1 %2254 }
 0x2ec   : > { %v2155_v58 = vpop.xlane.xlu0 %2154  ;;  %v2174_v60 = vpop.f32.mrf.mxu3 }
 0x2ed   : > { %4516 = vrcp.f32 %v2155_v58  ;;  %v2432_v62 = vpack.c.b16 %v2424_v56, %v2424_v56  ;;  %v2433_v63 = vpack.c.b16 %v2425_v57, %v2425_v57 }
 0x2ee   : > { %v2120_v1 = vpop.f32.mrf.mxu1  ;;  %v2282_v2 = vld [vmem:[#allocation2] sm:$0xff]  ;;  %4518 = vrcp.f32 %v2255_v10 }
 0x2ef   : > { %v2125_v3 = vmul.f32 %v4515_v0, %v2120_v1  ;;  %2864 = vmatmul.bf16.vlgmr.msra.gmra.mxu2 %v2432_v62  ;;  %2877 = vmatmul.bf16.vlgmr.msra.gmra.mxu3 %v2433_v63  ;;  %v2422_v4 = vunpack.c.l.b16 %v2282_v2  ;;  %v2423_v5 = vunpack.c.h.b16 %v2282_v2  ;;  %4520 = vrcp.f32 %v2203_v48 }
 0x2f1   : > { %v2126_v6 = vpack.c.bf16 %v2125_v3, %v2125_v3  ;;  %v2430_v7 = vpack.c.b16 %v2422_v4, %v2422_v4  ;;  %v2431_v8 = vpack.c.b16 %v2423_v5, %v2423_v5 }
 0x2f3   : > { %v4517_v9 = vpop.eup %4516  ;;  %2127 = vst [vmem:[#allocation2 + $0x10] sm:$0xf] %v2126_v6  ;;  %2838 = vmatmul.bf16.vlgmr.msra.gmra.mxu0 %v2430_v7  ;;  %2851 = vmatmul.bf16.vlgmr.msra.gmra.mxu1 %v2431_v8 }
 0x2f4   : > { %v2179_v11 = vmul.f32 %v4517_v9, %v2174_v60  ;;  %v2176_v14 = vpop.f32.mrf.mxu3  ;;  %v4519_v17 = vpop.eup %4518 }
 0x2f5   : > { %v4521_v20 = vpop.eup %4520 }
 0x2f6   : > { %v2180_v15 = vpack.c.bf16 %v2179_v11, %v2179_v11  ;;  %v2122_v16 = vpop.f32.mrf.mxu1 }
 0x2f8   : > { %2181 = vst [vmem:[#allocation2 + $0x14] sm:$0xf] %v2180_v15 }
 0x2fc   : > { %v2274_v18 = vpop.f32.mrf.mxu3 }
 0x2fd   : > { %v2279_v19 = vmul.f32 %v4519_v17, %v2274_v18 }
 0x2fe   : > { %v2220_v21 = vpop.f32.mrf.mxu1 }
 0x2ff   : > { %v2280_v22 = vpack.c.bf16 %v2279_v19, %v2279_v19  ;;  %v2225_v13 = vmul.f32 %v4521_v20, %v2220_v21  ;;  %v2284_v23 = vld [vmem:[#allocation2 + $0x10] sm:$0xff] }
 0x300   : > { %v2426_v24 = vunpack.c.l.b16 %v2284_v23  ;;  %v2427_v25 = vunpack.c.h.b16 %v2284_v23 }
 0x301   : > { %2281 = vst [vmem:[#allocation2 + $0x1c] sm:$0xf] %v2280_v22  ;;  %v2226_v26 = vpack.c.bf16 %v2225_v13, %v2225_v13 }
 0x302   : > { %v2434_v27 = vpack.c.b16 %v2426_v24, %v2426_v24  ;;  %v2435_v28 = vpack.c.b16 %v2427_v25, %v2427_v25 }
 0x303   : > { %2227 = vst [vmem:[#allocation2 + $0x18] sm:$0xf] %v2226_v26 }
 0x304   : > { %2890 = vmatmul.bf16.vlgmr.msrb.gmra.mxu0 %v2434_v27  ;;  %2903 = vmatmul.bf16.vlgmr.msrb.gmra.mxu1 %v2435_v28  ;;  %v2276_v29 = vpop.f32.mrf.mxu3 }
 0x306   : > { %v2222_v30 = vpop.f32.mrf.mxu1 }
 0x30a   : > { %v2285_v31 = vld [vmem:[#allocation2 + $0x18] sm:$0xff] }
 0x30b   : > { %v2428_v32 = vunpack.c.l.b16 %v2285_v31  ;;  %v2429_v33 = vunpack.c.h.b16 %v2285_v31 }
 0x30d   : > { %v2436_v34 = vpack.c.b16 %v2428_v32, %v2428_v32  ;;  %v2437_v35 = vpack.c.b16 %v2429_v33, %v2429_v33 }
 0x30f   : > { %2916 = vmatmul.bf16.vlgmr.msrb.gmra.mxu2 %v2436_v34  ;;  %2929 = vmatmul.bf16.vlgmr.msrb.gmra.mxu3 %v2437_v35 }
 0x370   : > { %v2839_v36 = vpop.f32.mrf.mxu0  ;;  %v2852_v37 = vpop.f32.mrf.mxu1 }
 0x371   : > { %v2840_v44 = vadd.f32 %v4489_v43, %v2839_v36 }
 0x372   : > { %v2865_v38 = vpop.f32.mrf.mxu2  ;;  %v2878_v46 = vpop.f32.mrf.mxu3 }
 0x373   : > { %v2853_v12 = vadd.f32 %v2852_v37, %v2840_v44 }
 0x375   : > { %v2866_v48 = vadd.f32 %v2865_v38, %v2853_v12 }
 0x377   : > { %v2879_v52 = vadd.f32 %v2878_v46, %v2866_v48 }
 0x378   : > { %v2841_v39 = vpop.f32.mrf.mxu0  ;;  %v2854_v40 = vpop.f32.mrf.mxu1 }
 0x37a   : > { %v2867_v41 = vpop.f32.mrf.mxu2  ;;  %v2880_v42 = vpop.f32.mrf.mxu3 }
 0x381   : > { %v2891_v45 = vpop.f32.mrf.mxu0  ;;  %v2904_v47 = vpop.f32.mrf.mxu1 }
 0x382   : > { %v2892_v53 = vadd.f32 %v2891_v45, %v2879_v52 }
 0x384   : > { %v2905_v50 = vadd.f32 %v2904_v47, %v2892_v53 }
 0x389   : > { %v2893_v49 = vpop.f32.mrf.mxu0  ;;  %v2906_v51 = vpop.f32.mrf.mxu1 }
 0x392   : > { %v2917_v54 = vpop.f32.mrf.mxu2  ;;  %v2930_v59 = vpop.f32.mrf.mxu3 }
 0x393   : > { %v2918_v55 = vadd.f32 %v2917_v54, %v2905_v50 }
 0x395   : > { %v2931_v56 = vadd.f32 %v2930_v59, %v2918_v55 }
 0x397   : > { %2934 = vst [vmem:[%s400_s11] sm:$0xff] %v2931_v56 }
 0x398   : > { %4729 = shalt.err (!%p4726_p10)
}
 0x399   : > { %4413 = dma.vmem_to_hbm [thread:$0]  (%p4921_p4), %s2949_s12, 128, %s2951_s30, %s2936_s13  }
 0x39a   : > { %v2919_v57 = vpop.f32.mrf.mxu2  ;;  %v2932_v58 = vpop.f32.mrf.mxu3 }
 0x39b PF: > { %s2962_s3 = sand.u32 1, %s4772_s24   ;;  %p5149_p11 = scmp.ge.s32.totalorder %s4784_s27, 2 }
 0x39c   : > { %s2963_s9 = scalar_lea.sflag [#allocation5], %s2962_s3 }
 0x39d   : > { %p4436_p5 = pnand %p5149_p11, %p4925_p6 }
 0x39f   : > { %p4437_p13 = pneg %p4436_p5 }
 0x3a1   : > { %4767 = dma.done.wait (%p4437_p13), %s2963_s9, 128  }
 0x3a2   : > { %4769 = vsyncadd (%p4437_p13), %s2963_s9, 4294967168  ;;  %s5150_s18 = sld [smem:[#allocation21_spill]]  ;;  %p25_p4 = scmp.ge.s32.totalorder %s4895_s17, 4  }
 0x3a3   : > { %s5151_s26 = sld [smem:[#allocation22_spill]]  ;;  %s5152_s24 = smov %s4776_s25 }
 0x3a4   : > { %s5154_s27 = smov %s4895_s17  ;;  %27 = sbr.rel (!%p25_p4) target bundleno = 14 (0xe), region = 122 }
 0x3a8   : > { %s5153_s25 = smov %s5150_s18 }
 0x3a9   :  { %2969 = vsyncpa [#allocation4], 1 }
 0x3aa   :  { %2971 = vsyncpa [#allocation4 + $0x1], 1 }
 0x3ab   :  { %2972 = vsyncpa [#allocation7], 1 }
 0x3ac   :  { %2974 = vsyncpa [#allocation7 + $0x1], 1 }
 0x3ad   :  { %2975 = vsyncpa [#allocation10], 1 }
 0x3ae   :  { %2976 = vsyncpa [#allocation13], 1 }
 0x3af   :  { %2977 = vsyncpa [#allocation5], 1 }
 0x3b0   :  { %2979 = vsyncpa [#allocation5 + $0x1], 1 }

</bundles_post_ra>
